<compile_context>
chip_gen: v5e
topology: v5e:2x2
jax: 0.10.0
libtpu: 0.0.40
codegen_flags: <defaults>
</compile_context>

<pallas_src>
import jax
import jax.numpy as jnp
from jax.experimental import pallas as pl
from jax.experimental.pallas import tpu as pltpu


# --------------------------------- kernel ---------------------------------- #

def sciw_kernel(prt_ref, qry_ref, sblk_ref, cw1_ref, cw2_ref, wp_ref, wq_ref):
    prt = prt_ref[...]          # (Np, M, C)  -- C on lanes, M on sublanes
    qry = qry_ref[...]          # (Nq, M, C)
    sblk = sblk_ref[...]        # (4, M+1, M) -- rows 0..M-1: folded W^T, row M: shift
    cw1 = cw1_ref[...]          # (2, C, C//2) pre-transposed 1x1-conv weights
    cw2 = cw2_ref[...]          # (2, C//2, C)
    m = prt.shape[1]

    def s_block(x, idx):
        # x: (N, M). Folded Linear+BN: x @ (W^T * scale) + shift; then 1 + tanh.
        y = jnp.dot(x, sblk[idx, :m, :], preferred_element_type=jnp.float32)
        y = y + sblk[idx, m, :]
        return 1.0 + jnp.tanh(y)

    def sj_block(x, idx):
        # x: (N, M, C). Adaptive max/avg pool over the spatial map == reduce over M.
        n = x.shape[0]
        mx = jnp.max(x, axis=1)          # (N, C)
        av = jnp.mean(x, axis=1)         # (N, C)
        cat = jnp.concatenate([mx, av], axis=0)                     # (2N, C)
        h = jnp.dot(cat, cw1[idx], preferred_element_type=jnp.float32)
        h = jnp.maximum(h, 0.0)                                     # ReLU
        z = jnp.dot(h, cw2[idx], preferred_element_type=jnp.float32)  # (2N, C)
        return jax.nn.sigmoid(z[:n] + z[n:])                        # (N, C)

    # channel-wise GAP (mean over C), then self-attention S_Blocks
    prt1 = jnp.mean(prt, axis=2)         # (Np, M)
    qry1 = jnp.mean(qry, axis=2)         # (Nq, M)
    s = s_block(prt1, 0)                 # (Np, M)
    q = s_block(qry1, 1)                 # (Nq, M)

    prt_s = prt * s[:, :, None]          # (Np, M, C)
    qry_s = qry * q[:, :, None]          # (Nq, M, C)

    # Sj_Blocks (channel attention over pooled features)
    prt2 = sj_block(prt_s, 0)            # (Np, C)
    qry2 = sj_block(qry_s, 1)            # (Nq, C)

    # squared distance to the channel-attention vector, reduced over C (lanes)
    dist1 = jnp.sum((prt_s - prt2[:, None, :]) ** 2, axis=2)        # (Np, M)
    dist2 = jnp.sum((qry_s - qry2[:, None, :]) ** 2, axis=2)        # (Nq, M)

    wp_ref[...] = s_block(-dist1, 2)     # (Np, M)
    wq_ref[...] = s_block(-dist2, 3)     # (Nq, M)


# -------------------------------- wrapper ----------------------------------- #

def sciw_forward(spt, qry, params):
    """spt: (way, shot, C, M); qry: (batch, 1, C, M). Returns (way*shot, batch, M)."""
    way, shot, c, m = spt.shape
    batch = qry.shape[0]

    # Activation layout plumbing: put C on the lane axis -> (N, M, C).
    prt = jnp.transpose(spt.reshape(way * shot, c, m), (0, 2, 1)).astype(jnp.float32)
    qry2d = jnp.transpose(qry[:, 0], (0, 2, 1)).astype(jnp.float32)

    # Parameter packing (all host-side / XLA-side, outside the kernel):
    #  - pre-transpose, fold BN scale into the weight, append the shift as an
    #    extra row -> one (4, M+1, M) slab for the four S_Blocks.
    def fold(prefix):
        wt = params[prefix + "_W"].T * params[prefix + "_scale"]    # (M, M)
        return jnp.concatenate([wt, params[prefix + "_shift"]], axis=0)  # (M+1, M)

    sblk = jnp.stack([fold("p"), fold("q"), fold("prt"), fold("qry")], axis=0)
    cw1 = jnp.stack([params["Sp_W1"].T, params["Sq_W1"].T], axis=0)  # (2, C, C//2)
    cw2 = jnp.stack([params["Sp_W2"].T, params["Sq_W2"].T], axis=0)  # (2, C//2, C)

    vmem = pl.BlockSpec(memory_space=pltpu.MemorySpace.VMEM)
    wp, wq = pl.pallas_call(
        sciw_kernel,
        out_shape=(jax.ShapeDtypeStruct((way * shot, m), jnp.float32),
                   jax.ShapeDtypeStruct((batch, m), jnp.float32)),
        in_specs=[vmem] * 5,
        out_specs=(vmem, vmem),
    )(prt, qry2d, sblk, cw1, cw2)

    # Tiny (Np, Nq, M) outer broadcast done in plain XLA (lane-dense kernel stores).
    return 0.5 * wp[:, None, :] + 0.5 * wq[None, :, :]


# ------------------------- pure-JAX reference check ------------------------- #

def sciw_reference(spt, qry, p):
    way, shot, c, m = spt.shape
    prt = spt.reshape(way * shot, c, m).astype(jnp.float32)
    qry2d = qry[:, 0].astype(jnp.float32)

    def s_block(x, W, sc, sh):
        return 1.0 + jnp.tanh(x @ W.T * sc + sh)

    def sj_block(x, W1, W2):
        mx, av = jnp.max(x, -1), jnp.mean(x, -1)
        mlp = lambda v: jnp.maximum(v @ W1.T, 0.0) @ W2.T
        return jax.nn.sigmoid(mlp(mx) + mlp(av))

    s = s_block(prt.mean(1), p["p_W"], p["p_scale"], p["p_shift"])
    q = s_block(qry2d.mean(1), p["q_W"], p["q_scale"], p["q_shift"])
    prt_s = prt * s[:, None, :]
    qry_s = qry2d * q[:, None, :]
    prt2 = sj_block(prt_s, p["Sp_W1"], p["Sp_W2"])
    qry2 = sj_block(qry_s, p["Sq_W1"], p["Sq_W2"])
    d1 = jnp.sum((prt_s - prt2[:, :, None]) ** 2, axis=1)
    d2 = jnp.sum((qry_s - qry2[:, :, None]) ** 2, axis=1)
    wp = s_block(-d1, p["prt_W"], p["prt_scale"], p["prt_shift"])
    wq = s_block(-d2, p["qry_W"], p["qry_scale"], p["qry_shift"])
    return 0.5 * wp[:, None, :] + 0.5 * wq[None, :, :]


# ----------------------------- parameter setup ------------------------------ #

def make_params(key, c, m):
    eps = 1e-5
    keys = iter(jax.random.split(key, 32))

    def xavier(k, shape):
        fan_out, fan_in = shape
        bound = (6.0 / (fan_in + fan_out)) ** 0.5
        return jax.random.uniform(k, shape, jnp.float32, -bound, bound)

    def s_block_params(prefix, out):
        W = xavier(next(keys), (m, m))
        gamma = jax.random.uniform(next(keys), (1, m), jnp.float32, 0.9, 1.1)
        beta = jax.random.uniform(next(keys), (1, m), jnp.float32, -0.05, 0.05)
        rmean = jax.random.uniform(next(keys), (1, m), jnp.float32, -0.1, 0.1)
        rvar = jax.random.uniform(next(keys), (1, m), jnp.float32, 0.9, 1.1)
        scale = gamma / jnp.sqrt(rvar + eps)          # folded eval-mode BN
        shift = beta - rmean * scale
        out[prefix + "_W"], out[prefix + "_scale"], out[prefix + "_shift"] = W, scale, shift

    def conv_w(k, shape):  # 1x1 conv weight (out_c, in_c)
        bound = 1.0 / (shape[1] ** 0.5)
        return jax.random.uniform(k, shape, jnp.float32, -bound, bound)

    p = {}
    for name in ("p", "q", "prt", "qry"):
        s_block_params(name, p)
    cr = c // 2
    p["Sp_W1"] = conv_w(next(keys), (cr, c))
    p["Sp_W2"] = conv_w(next(keys), (c, cr))
    p["Sq_W1"] = conv_w(next(keys), (cr, c))
    p["Sq_W2"] = conv_w(next(keys), (c, cr))
    return p


# ----------------------------------- main ------------------------------------ #

if __name__ == "__main__":
    way, shot, batch = 2, 2, 3
    c, m = 64, 25          # non-resnet config: in_c = 64, spatial 5x5 -> m = 25

    root = jax.random.PRNGKey(0)
    k_spt, k_qry, k_par = jax.random.split(root, 3)
    spt = jax.random.uniform(k_spt, (way, shot, c, m), jnp.float32)
    qry = jax.random.uniform(k_qry, (batch, 1, c, m), jnp.float32)
    params = make_params(k_par, c, m)

    out = jax.block_until_ready(sciw_forward(spt, qry, params))

    ref = sciw_reference(spt, qry, params)
    assert out.shape == (way * shot, batch, m)
    assert jnp.allclose(out, ref, rtol=1e-4, atol=1e-4), "mismatch vs reference"

    print("KERNEL_OK")
</pallas_src>

<mosaic_0001>
module attributes {stable_mosaic.version = 11 : i64} {
  func.func @sciw_kernel(%arg0: memref<4x25x64xf32, #tpu.memory_space<vmem>>, %arg1: memref<3x25x64xf32, #tpu.memory_space<vmem>>, %arg2: memref<4x26x25xf32, #tpu.memory_space<vmem>>, %arg3: memref<2x64x32xf32, #tpu.memory_space<vmem>>, %arg4: memref<2x32x64xf32, #tpu.memory_space<vmem>>, %arg5: memref<4x25xf32, #tpu.memory_space<vmem>>, %arg6: memref<3x25xf32, #tpu.memory_space<vmem>>) attributes {dimension_semantics = [], scalar_prefetch = 0 : i64, scratch_operands = 0 : i64, tpu.core_type = #tpu.core_type<tc>} {
    %c0 = arith.constant 0 : index
    %c0_0 = arith.constant 0 : index
    %c0_1 = arith.constant 0 : index
    %0 = vector.load %arg0[%c0, %c0_0, %c0_1] : memref<4x25x64xf32, #tpu.memory_space<vmem>>, vector<4x25x64xf32>
    %c0_2 = arith.constant 0 : index
    %c0_3 = arith.constant 0 : index
    %c0_4 = arith.constant 0 : index
    %1 = vector.load %arg1[%c0_2, %c0_3, %c0_4] : memref<3x25x64xf32, #tpu.memory_space<vmem>>, vector<3x25x64xf32>
    %c0_5 = arith.constant 0 : index
    %c0_6 = arith.constant 0 : index
    %c0_7 = arith.constant 0 : index
    %2 = vector.load %arg2[%c0_5, %c0_6, %c0_7] : memref<4x26x25xf32, #tpu.memory_space<vmem>>, vector<4x26x25xf32>
    %c0_8 = arith.constant 0 : index
    %c0_9 = arith.constant 0 : index
    %c0_10 = arith.constant 0 : index
    %3 = vector.load %arg3[%c0_8, %c0_9, %c0_10] : memref<2x64x32xf32, #tpu.memory_space<vmem>>, vector<2x64x32xf32>
    %c0_11 = arith.constant 0 : index
    %c0_12 = arith.constant 0 : index
    %c0_13 = arith.constant 0 : index
    %4 = vector.load %arg4[%c0_11, %c0_12, %c0_13] : memref<2x32x64xf32, #tpu.memory_space<vmem>>, vector<2x32x64xf32>
    %cst = arith.constant dense<0.000000e+00> : vector<4x25xf32>
    %5 = vector.multi_reduction <add>, %0, %cst [2] : vector<4x25x64xf32> to vector<4x25xf32>
    %cst_14 = arith.constant 6.400000e+01 : f32
    %6 = vector.broadcast %cst_14 : f32 to vector<4x25xf32>
    %7 = arith.divf %5, %6 : vector<4x25xf32>
    %cst_15 = arith.constant dense<0.000000e+00> : vector<3x25xf32>
    %8 = vector.multi_reduction <add>, %1, %cst_15 [2] : vector<3x25x64xf32> to vector<3x25xf32>
    %cst_16 = arith.constant 6.400000e+01 : f32
    %9 = vector.broadcast %cst_16 : f32 to vector<3x25xf32>
    %10 = arith.divf %8, %9 : vector<3x25xf32>
    %11 = vector.extract_strided_slice %2 {offsets = [0, 0, 0], sizes = [1, 25, 25], strides = [1, 1, 1]} : vector<4x26x25xf32> to vector<1x25x25xf32>
    %12 = vector.shape_cast %11 : vector<1x25x25xf32> to vector<25x25xf32>
    %cst_17 = arith.constant dense<0.000000e+00> : vector<4x25xf32>
    %13 = tpu.matmul %7, %12, %cst_17 {dimension_numbers = #tpu.dot_dimension_numbers<[1], [0], [0], [1], [0, 0, 1, 1], [], []>} : vector<4x25xf32>, vector<25x25xf32>, vector<4x25xf32> -> vector<4x25xf32>
    %14 = vector.extract_strided_slice %2 {offsets = [0, 25, 0], sizes = [1, 1, 25], strides = [1, 1, 1]} : vector<4x26x25xf32> to vector<1x1x25xf32>
    %15 = vector.shape_cast %14 : vector<1x1x25xf32> to vector<25xf32>
    %16 = vector.shape_cast %15 : vector<25xf32> to vector<1x25xf32>
    %17 = vector.broadcast %16 : vector<1x25xf32> to vector<4x25xf32>
    %18 = arith.addf %13, %17 : vector<4x25xf32>
    %19 = math.tanh %18 : vector<4x25xf32>
    %cst_18 = arith.constant 1.000000e+00 : f32
    %20 = vector.broadcast %cst_18 : f32 to vector<4x25xf32>
    %21 = arith.addf %20, %19 : vector<4x25xf32>
    %22 = vector.extract_strided_slice %2 {offsets = [1, 0, 0], sizes = [1, 25, 25], strides = [1, 1, 1]} : vector<4x26x25xf32> to vector<1x25x25xf32>
    %23 = vector.shape_cast %22 : vector<1x25x25xf32> to vector<25x25xf32>
    %cst_19 = arith.constant dense<0.000000e+00> : vector<3x25xf32>
    %24 = tpu.matmul %10, %23, %cst_19 {dimension_numbers = #tpu.dot_dimension_numbers<[1], [0], [0], [1], [0, 0, 1, 1], [], []>} : vector<3x25xf32>, vector<25x25xf32>, vector<3x25xf32> -> vector<3x25xf32>
    %25 = vector.extract_strided_slice %2 {offsets = [1, 25, 0], sizes = [1, 1, 25], strides = [1, 1, 1]} : vector<4x26x25xf32> to vector<1x1x25xf32>
    %26 = vector.shape_cast %25 : vector<1x1x25xf32> to vector<25xf32>
    %27 = vector.shape_cast %26 : vector<25xf32> to vector<1x25xf32>
    %28 = vector.broadcast %27 : vector<1x25xf32> to vector<3x25xf32>
    %29 = arith.addf %24, %28 : vector<3x25xf32>
    %30 = math.tanh %29 : vector<3x25xf32>
    %cst_20 = arith.constant 1.000000e+00 : f32
    %31 = vector.broadcast %cst_20 : f32 to vector<3x25xf32>
    %32 = arith.addf %31, %30 : vector<3x25xf32>
    %33 = vector.shape_cast %21 : vector<4x25xf32> to vector<4x25x1xf32>
    %34 = vector.broadcast %33 : vector<4x25x1xf32> to vector<4x25x64xf32>
    %35 = arith.mulf %0, %34 : vector<4x25x64xf32>
    %36 = vector.shape_cast %32 : vector<3x25xf32> to vector<3x25x1xf32>
    %37 = vector.broadcast %36 : vector<3x25x1xf32> to vector<3x25x64xf32>
    %38 = arith.mulf %1, %37 : vector<3x25x64xf32>
    %cst_21 = arith.constant dense<0xFF800000> : vector<4x64xf32>
    %39 = vector.multi_reduction <maximumf>, %35, %cst_21 [1] : vector<4x25x64xf32> to vector<4x64xf32>
    %cst_22 = arith.constant dense<0.000000e+00> : vector<4x64xf32>
    %40 = vector.multi_reduction <add>, %35, %cst_22 [1] : vector<4x25x64xf32> to vector<4x64xf32>
    %cst_23 = arith.constant 2.500000e+01 : f32
    %41 = vector.broadcast %cst_23 : f32 to vector<4x64xf32>
    %42 = arith.divf %40, %41 : vector<4x64xf32>
    %43 = tpu.concatenate %39, %42 in 0 : vector<4x64xf32>, vector<4x64xf32> -> vector<8x64xf32>
    %44 = vector.extract_strided_slice %3 {offsets = [0, 0, 0], sizes = [1, 64, 32], strides = [1, 1, 1]} : vector<2x64x32xf32> to vector<1x64x32xf32>
    %45 = vector.shape_cast %44 : vector<1x64x32xf32> to vector<64x32xf32>
    %cst_24 = arith.constant dense<0.000000e+00> : vector<8x32xf32>
    %46 = tpu.matmul %43, %45, %cst_24 {dimension_numbers = #tpu.dot_dimension_numbers<[1], [0], [0], [1], [0, 0, 1, 1], [], []>} : vector<8x64xf32>, vector<64x32xf32>, vector<8x32xf32> -> vector<8x32xf32>
    %cst_25 = arith.constant 0.000000e+00 : f32
    %47 = vector.broadcast %cst_25 : f32 to vector<8x32xf32>
    %48 = arith.maximumf %46, %47 : vector<8x32xf32>
    %49 = vector.extract_strided_slice %4 {offsets = [0, 0, 0], sizes = [1, 32, 64], strides = [1, 1, 1]} : vector<2x32x64xf32> to vector<1x32x64xf32>
    %50 = vector.shape_cast %49 : vector<1x32x64xf32> to vector<32x64xf32>
    %cst_26 = arith.constant dense<0.000000e+00> : vector<8x64xf32>
    %51 = tpu.matmul %48, %50, %cst_26 {dimension_numbers = #tpu.dot_dimension_numbers<[1], [0], [0], [1], [0, 0, 1, 1], [], []>} : vector<8x32xf32>, vector<32x64xf32>, vector<8x64xf32> -> vector<8x64xf32>
    %52 = vector.extract_strided_slice %51 {offsets = [0, 0], sizes = [4, 64], strides = [1, 1]} : vector<8x64xf32> to vector<4x64xf32>
    %53 = vector.extract_strided_slice %51 {offsets = [4, 0], sizes = [4, 64], strides = [1, 1]} : vector<8x64xf32> to vector<4x64xf32>
    %54 = arith.addf %52, %53 : vector<4x64xf32>
    %55 = arith.negf %54 : vector<4x64xf32>
    %56 = math.exp %55 : vector<4x64xf32>
    %cst_27 = arith.constant 1.000000e+00 : f32
    %57 = vector.broadcast %cst_27 : f32 to vector<4x64xf32>
    %58 = arith.addf %57, %56 : vector<4x64xf32>
    %59 = arith.divf %57, %58 : vector<4x64xf32>
    %cst_28 = arith.constant dense<0xFF800000> : vector<3x64xf32>
    %60 = vector.multi_reduction <maximumf>, %38, %cst_28 [1] : vector<3x25x64xf32> to vector<3x64xf32>
    %cst_29 = arith.constant dense<0.000000e+00> : vector<3x64xf32>
    %61 = vector.multi_reduction <add>, %38, %cst_29 [1] : vector<3x25x64xf32> to vector<3x64xf32>
    %cst_30 = arith.constant 2.500000e+01 : f32
    %62 = vector.broadcast %cst_30 : f32 to vector<3x64xf32>
    %63 = arith.divf %61, %62 : vector<3x64xf32>
    %64 = tpu.concatenate %60, %63 in 0 : vector<3x64xf32>, vector<3x64xf32> -> vector<6x64xf32>
    %65 = vector.extract_strided_slice %3 {offsets = [1, 0, 0], sizes = [1, 64, 32], strides = [1, 1, 1]} : vector<2x64x32xf32> to vector<1x64x32xf32>
    %66 = vector.shape_cast %65 : vector<1x64x32xf32> to vector<64x32xf32>
    %cst_31 = arith.constant dense<0.000000e+00> : vector<6x32xf32>
    %67 = tpu.matmul %64, %66, %cst_31 {dimension_numbers = #tpu.dot_dimension_numbers<[1], [0], [0], [1], [0, 0, 1, 1], [], []>} : vector<6x64xf32>, vector<64x32xf32>, vector<6x32xf32> -> vector<6x32xf32>
    %cst_32 = arith.constant 0.000000e+00 : f32
    %68 = vector.broadcast %cst_32 : f32 to vector<6x32xf32>
    %69 = arith.maximumf %67, %68 : vector<6x32xf32>
    %70 = vector.extract_strided_slice %4 {offsets = [1, 0, 0], sizes = [1, 32, 64], strides = [1, 1, 1]} : vector<2x32x64xf32> to vector<1x32x64xf32>
    %71 = vector.shape_cast %70 : vector<1x32x64xf32> to vector<32x64xf32>
    %cst_33 = arith.constant dense<0.000000e+00> : vector<6x64xf32>
    %72 = tpu.matmul %69, %71, %cst_33 {dimension_numbers = #tpu.dot_dimension_numbers<[1], [0], [0], [1], [0, 0, 1, 1], [], []>} : vector<6x32xf32>, vector<32x64xf32>, vector<6x64xf32> -> vector<6x64xf32>
    %73 = vector.extract_strided_slice %72 {offsets = [0, 0], sizes = [3, 64], strides = [1, 1]} : vector<6x64xf32> to vector<3x64xf32>
    %74 = vector.extract_strided_slice %72 {offsets = [3, 0], sizes = [3, 64], strides = [1, 1]} : vector<6x64xf32> to vector<3x64xf32>
    %75 = arith.addf %73, %74 : vector<3x64xf32>
    %76 = arith.negf %75 : vector<3x64xf32>
    %77 = math.exp %76 : vector<3x64xf32>
    %cst_34 = arith.constant 1.000000e+00 : f32
    %78 = vector.broadcast %cst_34 : f32 to vector<3x64xf32>
    %79 = arith.addf %78, %77 : vector<3x64xf32>
    %80 = arith.divf %78, %79 : vector<3x64xf32>
    %81 = vector.shape_cast %59 : vector<4x64xf32> to vector<4x1x64xf32>
    %82 = vector.broadcast %81 : vector<4x1x64xf32> to vector<4x25x64xf32>
    %83 = arith.subf %35, %82 : vector<4x25x64xf32>
    %84 = arith.mulf %83, %83 : vector<4x25x64xf32>
    %cst_35 = arith.constant dense<0.000000e+00> : vector<4x25xf32>
    %85 = vector.multi_reduction <add>, %84, %cst_35 [2] : vector<4x25x64xf32> to vector<4x25xf32>
    %86 = vector.shape_cast %80 : vector<3x64xf32> to vector<3x1x64xf32>
    %87 = vector.broadcast %86 : vector<3x1x64xf32> to vector<3x25x64xf32>
    %88 = arith.subf %38, %87 : vector<3x25x64xf32>
    %89 = arith.mulf %88, %88 : vector<3x25x64xf32>
    %cst_36 = arith.constant dense<0.000000e+00> : vector<3x25xf32>
    %90 = vector.multi_reduction <add>, %89, %cst_36 [2] : vector<3x25x64xf32> to vector<3x25xf32>
    %cst_37 = arith.constant 0.000000e+00 : f32
    %91 = vector.broadcast %cst_37 : f32 to vector<4x25xf32>
    %92 = arith.subf %91, %85 : vector<4x25xf32>
    %93 = vector.extract_strided_slice %2 {offsets = [2, 0, 0], sizes = [1, 25, 25], strides = [1, 1, 1]} : vector<4x26x25xf32> to vector<1x25x25xf32>
    %94 = vector.shape_cast %93 : vector<1x25x25xf32> to vector<25x25xf32>
    %cst_38 = arith.constant dense<0.000000e+00> : vector<4x25xf32>
    %95 = tpu.matmul %92, %94, %cst_38 {dimension_numbers = #tpu.dot_dimension_numbers<[1], [0], [0], [1], [0, 0, 1, 1], [], []>} : vector<4x25xf32>, vector<25x25xf32>, vector<4x25xf32> -> vector<4x25xf32>
    %96 = vector.extract_strided_slice %2 {offsets = [2, 25, 0], sizes = [1, 1, 25], strides = [1, 1, 1]} : vector<4x26x25xf32> to vector<1x1x25xf32>
    %97 = vector.shape_cast %96 : vector<1x1x25xf32> to vector<25xf32>
    %98 = vector.shape_cast %97 : vector<25xf32> to vector<1x25xf32>
    %99 = vector.broadcast %98 : vector<1x25xf32> to vector<4x25xf32>
    %100 = arith.addf %95, %99 : vector<4x25xf32>
    %101 = math.tanh %100 : vector<4x25xf32>
    %cst_39 = arith.constant 1.000000e+00 : f32
    %102 = vector.broadcast %cst_39 : f32 to vector<4x25xf32>
    %103 = arith.addf %102, %101 : vector<4x25xf32>
    %c0_40 = arith.constant 0 : index
    %c0_41 = arith.constant 0 : index
    %104 = vector.load %arg5[%c0_40, %c0_41] : memref<4x25xf32, #tpu.memory_space<vmem>>, vector<4x25xf32>
    tpu.vector_store %arg5[%c0_40, %c0_41], %103 {strides = array<i32>} : memref<4x25xf32, #tpu.memory_space<vmem>>, vector<4x25xf32>,
    %cst_42 = arith.constant 0.000000e+00 : f32
    %105 = vector.broadcast %cst_42 : f32 to vector<3x25xf32>
    %106 = arith.subf %105, %90 : vector<3x25xf32>
    %107 = vector.extract_strided_slice %2 {offsets = [3, 0, 0], sizes = [1, 25, 25], strides = [1, 1, 1]} : vector<4x26x25xf32> to vector<1x25x25xf32>
    %108 = vector.shape_cast %107 : vector<1x25x25xf32> to vector<25x25xf32>
    %cst_43 = arith.constant dense<0.000000e+00> : vector<3x25xf32>
    %109 = tpu.matmul %106, %108, %cst_43 {dimension_numbers = #tpu.dot_dimension_numbers<[1], [0], [0], [1], [0, 0, 1, 1], [], []>} : vector<3x25xf32>, vector<25x25xf32>, vector<3x25xf32> -> vector<3x25xf32>
    %110 = vector.extract_strided_slice %2 {offsets = [3, 25, 0], sizes = [1, 1, 25], strides = [1, 1, 1]} : vector<4x26x25xf32> to vector<1x1x25xf32>
    %111 = vector.shape_cast %110 : vector<1x1x25xf32> to vector<25xf32>
    %112 = vector.shape_cast %111 : vector<25xf32> to vector<1x25xf32>
    %113 = vector.broadcast %112 : vector<1x25xf32> to vector<3x25xf32>
    %114 = arith.addf %109, %113 : vector<3x25xf32>
    %115 = math.tanh %114 : vector<3x25xf32>
    %cst_44 = arith.constant 1.000000e+00 : f32
    %116 = vector.broadcast %cst_44 : f32 to vector<3x25xf32>
    %117 = arith.addf %116, %115 : vector<3x25xf32>
    %c0_45 = arith.constant 0 : index
    %c0_46 = arith.constant 0 : index
    %118 = vector.load %arg6[%c0_45, %c0_46] : memref<3x25xf32, #tpu.memory_space<vmem>>, vector<3x25xf32>
    tpu.vector_store %arg6[%c0_45, %c0_46], %117 {strides = array<i32>} : memref<3x25xf32, #tpu.memory_space<vmem>>, vector<3x25xf32>,
    return
  }
}

</mosaic_0001>

<bundles_post_ra>
// kernel: tpu_custom_call.1
= control target key start
LH: loop header
LB: loop body
LE: loop exit
PB: predicated region body
PF: predicated region fallthrough
CT: control target
= control target key end

     0   :  { %12 = vsyncpa [#allocation3], 0  ;;  %vm92_vm0 = vcmask 523264   ;;  %s2287_s0 = inlined_call_operand.vmem [shape: f32[4,25,64], index: 0, kind: input, shape index: {}]   ;;  %s2288_s1 = inlined_call_operand.vmem [shape: f32[3,25,64], index: 1, kind: input, shape index: {}]   ;;  %s2289_s2 = inlined_call_operand.vmem [shape: f32[4,26,25], index: 2, kind: input, shape index: {}]   ;;  %s2290_s3 = inlined_call_operand.vmem [shape: f32[2,64,32], index: 3, kind: input, shape index: {}]   ;;  %s2291_s4 = inlined_call_operand.vmem [shape: f32[2,32,64], index: 4, kind: input, shape index: {}]   ;;  %s2292_s5 = inlined_call_operand.hbm [shape: f32[4,25], index: 5, kind: output, shape index: {0}]   ;;  %s2293_s6 = inlined_call_operand.hbm [shape: f32[3,25], index: 6, kind: output, shape index: {1}]  }
   0x1   :  { %v1456_v0 = vld [vmem:[%s2287_s0 + $0x20] sm:$0xff]  ;;  %v1461_v1 = vld [vmem:[%s2287_s0 + $0x10] sm:$0xff]  ;;  %v1477_v6 = vld [vmem:[%s2287_s0 + $0x28] sm:$0xff] }
   0x2   :  { %v1466_v2 = vld [vmem:[%s2287_s0] sm:$0xff]  ;;  %v106_v3 = vsel %vm92_vm0, %v1456_v0, 0.0  ;;  %v99_v4 = vsel %vm92_vm0, %v1461_v1, 0.0  ;;  %v1482_v7 = vld [vmem:[%s2287_s0 + $0x30] sm:$0xff]  ;;  %v1487_v8 = vld [vmem:[%s2287_s0 + $0x8] sm:$0xff] }
   0x3   :  { %v93_v5 = vsel %vm92_vm0, %v1466_v2, 0.0  ;;  %107 = vadd.xlane.f32.xlu1 %v106_v3  ;;  %100 = vadd.xlane.f32.xlu2 %v99_v4 }
   0x4   :  { %94 = vadd.xlane.f32.xlu0 %v93_v5 }
   0x5   :  { %13 = vsyncpa [#allocation5], 0  ;;  %v109_v9 = vsel %vm92_vm0, %v1477_v6, 0.0  ;;  %v112_v10 = vsel %vm92_vm0, %v1482_v7, 0.0  ;;  %v96_v11 = vsel %vm92_vm0, %v1487_v8, 0.0  ;;  %v1498_v12 = vld [vmem:[%s2287_s0 + $0x48] sm:$0xff] }
   0x6   :  { %v1503_v13 = vld [vmem:[%s2287_s0 + $0x18] sm:$0x1]  ;;  %vm102_vm1 = vcmask 516096   ;;  %v1508_v14 = vld [vmem:[%s2287_s0 + $0x40] sm:$0xff]  ;;  %v121_v15 = vsel %vm92_vm0, %v1498_v12, 0.0  ;;  %v1519_v18 = vld [vmem:[%s2287_s0 + $0x50] sm:$0xff] }
   0x7   :  { %v103_v16 = vsel %vm102_vm1, %v1503_v13, 0.0  ;;  %v118_v17 = vsel %vm92_vm0, %v1508_v14, 0.0  ;;  %v1524_v19 = vld [vmem:[%s2287_s0 + $0x60] sm:$0xff]  ;;  %v1529_v20 = vld [vmem:[%s2287_s0 + $0x38] sm:$0x1]  ;;  %v124_v21 = vsel %vm92_vm0, %v1519_v18, 0.0 }
   0x8   :  { %v130_v22 = vsel %vm92_vm0, %v1524_v19, 0.0  ;;  %v115_v23 = vsel %vm102_vm1, %v1529_v20, 0.0  ;;  %v1540_v24 = vld [vmem:[%s2287_s0 + $0x58] sm:$0x1]  ;;  %v1545_v25 = vld [vmem:[%s2287_s0 + $0x70] sm:$0xff]  ;;  %v1550_v26 = vld [vmem:[%s2287_s0 + $0x68] sm:$0xff] }
   0x9   :  { %v127_v27 = vsel %vm102_vm1, %v1540_v24, 0.0  ;;  %v136_v28 = vsel %vm92_vm0, %v1545_v25, 0.0  ;;  %v133_v29 = vsel %vm92_vm0, %v1550_v26, 0.0  ;;  %v1561_v30 = vld [vmem:[%s2288_s1] sm:$0xff]  ;;  %v1566_v31 = vld [vmem:[%s2288_s1 + $0x8] sm:$0xff]  ;;  %v1587_v37 = vld [vmem:[%s2288_s1 + $0x10] sm:$0xff] }
   0xa   :  { %v1571_v32 = vld [vmem:[%s2287_s0 + $0x78] sm:$0x1]  ;;  %v165_v33 = vsel %vm92_vm0, %v1561_v30, 0.0  ;;  %v168_v34 = vsel %vm92_vm0, %v1566_v31, 0.0  ;;  %v1582_v36 = vld [vmem:[%s2288_s1 + $0x28] sm:$0xff]  ;;  %v1592_v38 = vld [vmem:[%s2288_s1 + $0x20] sm:$0xff] }
   0xb   :  { %110 = vadd.xlane.f32.xlu1 %v109_v9  ;;  %113 = vadd.xlane.f32.xlu2 %v112_v10  ;;  %v139_v35 = vsel %vm102_vm1, %v1571_v32, 0.0  ;;  %v180_v39 = vsel %vm92_vm0, %v1582_v36, 0.0  ;;  %v171_v40 = vsel %vm92_vm0, %v1587_v37, 0.0  ;;  %v177_v41 = vsel %vm92_vm0, %v1592_v38, 0.0  ;;  %v1603_v42 = vld [vmem:[%s2288_s1 + $0x40] sm:$0xff]  ;;  %v1608_v43 = vld [vmem:[%s2288_s1 + $0x48] sm:$0xff] }
   0xc   :  { %97 = vadd.xlane.f32.xlu0 %v96_v11  ;;  %v1613_v44 = vld [vmem:[%s2288_s1 + $0x30] sm:$0xff]  ;;  %v189_v45 = vsel %vm92_vm0, %v1603_v42, 0.0  ;;  %v192_v46 = vsel %vm92_vm0, %v1608_v43, 0.0  ;;  %v1624_v48 = vld [vmem:[%s2288_s1 + $0x38] sm:$0x1]  ;;  %v1414_v59 = vmov 64.0  }
   0xd   :  { %v183_v47 = vsel %vm92_vm0, %v1613_v44, 0.0  ;;  %v1629_v49 = vld [vmem:[%s2288_s1 + $0x50] sm:$0xff]  ;;  %v1634_v50 = vld [vmem:[%s2288_s1 + $0x18] sm:$0x1]  ;;  %v186_v51 = vsel %vm102_vm1, %v1624_v48, 0.0  ;;  %1342 = vrcp.f32 %v1414_v59  ;;  %vm275_vm2 = vcmask 1040384  }
   0xe   :  { %v195_v52 = vsel %vm92_vm0, %v1629_v49, 0.0  ;;  %v174_v53 = vsel %vm102_vm1, %v1634_v50, 0.0  ;;  %v1645_v54 = vld [vmem:[%s2288_s1 + $0x58] sm:$0x1]  ;;  %v54_v4 = vld [vmem:[%s2289_s2 + $0x10] sm:$0xff]  ;;  %v53_v9 = vld [vmem:[%s2289_s2 + $0x8] sm:$0xff] }
   0xf   :  { %v198_v55 = vsel %vm102_vm1, %v1645_v54, 0.0  ;;  %v1652_v60 = vld [vmem:[%s2289_s2 + $0x18] sm:$0x3]  ;;  %v52_v10 = vld [vmem:[%s2289_s2] sm:$0xff]  ;;  %vm235_vm4 = vcmask 130112   ;;  %vm239_vm5 = vcmask 195712  }
  0x10   :  { %1303 = vmatpush.msk.msra.mxu0 %vm275_vm2, %v1652_v60  ;;  %vm243_vm6 = vcmask 261312   ;;  %vm266_vm7 = vcmask 1041409   ;;  %vm268_vm8 = vcmask 1042434   ;;  %vm270_vm9 = vcmask 1043459   ;;  %s1278_s1 = sshll.u32 %s2292_s5, 4  ;;  %s1417_s30 = smov [#allocation4]   ;;  %s1279_s1 = int_to_ptr.hbm [resolvable:$true] %s1278_s1 }
  0x11   :  { %vm272_vm10 = vcmask 203776   ;;  %vm694_vm12 = vcmask 1045509   ;;  %vm696_vm13 = vcmask 1046534   ;;  %vm698_vm14 = vcmask 1047559   ;;  %s1287_s7 = sshll.u32 %s1417_s30, 4  ;;  %s1289_s10 = sshll.u32 %s2293_s6, 4  ;;  %s1288_s7 = int_to_ptr.vmem [resolvable:$true] %s1287_s7  ;;  %s1290_s10 = int_to_ptr.hbm [resolvable:$true] %s1289_s10 }
  0x12   :  { %292 = vmatpush.msra.mxu0 %v54_v4  ;;  %vm701_vm15 = vcmask 1043456  }
  0x13   :  { %122 = vadd.xlane.f32.xlu1 %v121_v15  ;;  %104 = vadd.xlane.f32.xlu2 %v103_v16  ;;  %v1343_v63 = vpop.eup %1342 }
  0x14   :  { %119 = vadd.xlane.f32.xlu0 %v118_v17  ;;  %v143_v5 = vmul.f32 64.0, %v1343_v63  ;;  %293 = vmatpush.msra.mxu0 %v53_v9  ;;  %vm147_vm3 = vweird.f32 %v1343_v63 }
  0x16   :  { %294 = vmatpush.msra.mxu0 %v52_v10  ;;  %v144_v11 = vsub.f32 1.0, %v143_v5 }
  0x1b   :  { %125 = vadd.xlane.f32.xlu1 %v124_v21  ;;  %131 = vadd.xlane.f32.xlu2 %v130_v22  ;;  %v145_v21 = vmul.f32 %v1343_v63, %v144_v11  ;;  %v230_v22 = vlaneseq }
  0x1c   :  { %116 = vadd.xlane.f32.xlu0 %v115_v23 }
  0x1d   :  { %v146_v23 = vadd.f32 %v1343_v63, %v145_v21  ;;  %v1701_v21 = vld [vmem:[%s2289_s2 + $0x38] sm:$0x3] }
  0x1e   :  { %1305 = vmatpush.msk.msra.mxu1 %vm275_vm2, %v1701_v21 }
  0x23   :  { %128 = vadd.xlane.f32.xlu1 %v127_v27  ;;  %137 = vadd.xlane.f32.xlu2 %v136_v28 }
  0x24   :  { %134 = vadd.xlane.f32.xlu0 %v133_v29 }
  0x2b   :  { %166 = vadd.xlane.f32.xlu1 %v165_v33  ;;  %169 = vadd.xlane.f32.xlu2 %v168_v34  ;;  %v1666_v33 = vand.u32 127, %v230_v22  ;;  %v1668_v34 = vsel %vm147_vm3, %v1343_v63, %v146_v23  ;;  %vm864_vm3 = vcmask 1044484  }
  0x2c   :  { %140 = vadd.xlane.f32.xlu0 %v139_v35 }
  0x2d   :  { %2303 = vst [vmem:[#allocation8_spill] sm:$0xff] %v1666_v33  ;;  %v1691_v5 = vadd.s32 4294967272, %v1666_v33 }
  0x2f   :  { %2306 = vst [vmem:[#allocation11_spill] sm:$0xff] %v1691_v5 }
  0x33   :  { %181 = vadd.xlane.f32.xlu1 %v180_v39  ;;  %172 = vadd.xlane.f32.xlu2 %v171_v40  ;;  %v1672_v39 = vadd.s32 4294967288, %v1666_v33 }
  0x34   :  { %178 = vadd.xlane.f32.xlu0 %v177_v41  ;;  %v1676_v41 = vadd.s32 4294967280, %v1666_v33 }
  0x35   :  { %2304 = vst [vmem:[#allocation9_spill] sm:$0xff] %v1672_v39 }
  0x36   :  { %2305 = vst [vmem:[#allocation10_spill] sm:$0xff] %v1676_v41 }
  0x3b   :  { %190 = vadd.xlane.f32.xlu1 %v189_v45  ;;  %193 = vadd.xlane.f32.xlu2 %v192_v46 }
  0x3c   :  { %184 = vadd.xlane.f32.xlu0 %v183_v47 }
  0x43   :  { %187 = vadd.xlane.f32.xlu1 %v186_v51  ;;  %196 = vadd.xlane.f32.xlu2 %v195_v52 }
  0x44   :  { %175 = vadd.xlane.f32.xlu0 %v174_v53 }
  0x4c   :  { %199 = vadd.xlane.f32.xlu0 %v198_v55 }
  0x76   :  { %v108_v56 = vpop.xlane.xlu1 %107  ;;  %v101_v57 = vpop.xlane.xlu2 %100 }
  0x77   :  { %v95_v58 = vpop.xlane.xlu0 %94  ;;  %v153_v35 = vmul.f32 %v1668_v34, %v108_v56 }
  0x78   :  { %v149_v45 = vmul.f32 %v1668_v34, %v95_v58 }
  0x79   :  { %v245_v53 = vperm.slane %v153_v35, %v1666_v33 }
  0x7a   :  { %v232_v10 = vperm.slane %v149_v45, %v1666_v33 }
  0x7e   :  { %v111_v61 = vpop.xlane.xlu1 %110  ;;  %v114_v62 = vpop.xlane.xlu2 %113 }
  0x7f   :  { %v98_v3 = vpop.xlane.xlu0 %97  ;;  %v154_v40 = vmul.f32 %v1668_v34, %v111_v61  ;;  %v155_v46 = vmul.f32 %v1668_v34, %v114_v62 }
  0x80   :  { %v150_v47 = vmul.f32 %v1668_v34, %v98_v3  ;;  %v151_v3 = vmul.f32 %v1668_v34, %v101_v57 }
  0x81   :  { %v246_v55 = vperm.slane %v154_v40, %v1672_v39  ;;  %v248_v11 = vperm.slane %v155_v46, %v1676_v41 }
  0x83   :  { %v247_v57 = vsel %vm235_vm4, %v246_v55, %v245_v53  ;;  %v238_v53 = vperm.slane %v151_v3, %v1676_v41 }
  0x84   :  { %v249_v55 = vsel %vm239_vm5, %v248_v11, %v247_v57  ;;  %v56_v57 = vld [vmem:[%s2289_s2 + $0x20] sm:$0xff] }
  0x86   :  { %v123_v15 = vpop.xlane.xlu1 %122  ;;  %v105_v16 = vpop.xlane.xlu2 %104 }
  0x87   :  { %v120_v17 = vpop.xlane.xlu0 %119  ;;  %v158_v56 = vmul.f32 %v1668_v34, %v123_v15  ;;  %v234_v15 = vperm.slane %v150_v47, %v1672_v39 }
  0x88   :  { %v157_v59 = vmul.f32 %v1668_v34, %v120_v17  ;;  %v152_v17 = vmul.f32 %v1668_v34, %v105_v16 }
  0x89   :  { %v253_v23 = vperm.slane %v158_v56, %v1672_v39  ;;  %v236_v46 = vsel %vm235_vm4, %v234_v15, %v232_v10 }
  0x8a   :  { %v242_v47 = vperm.slane %v152_v17, %v1691_v5  ;;  %v240_v3 = vsel %vm239_vm5, %v238_v53, %v236_v46  ;;  %v57_v17 = vld [vmem:[%s2289_s2 + $0x28] sm:$0xff] }
  0x8c   :  { %v244_v11 = vsel %vm243_vm6, %v242_v47, %v240_v3 }
  0x8e   :  { %v126_v27 = vpop.xlane.xlu1 %125  ;;  %v132_v28 = vpop.xlane.xlu2 %131 }
  0x8f   :  { %v117_v29 = vpop.xlane.xlu0 %116  ;;  %v159_v63 = vmul.f32 %v1668_v34, %v126_v27  ;;  %v161_v58 = vmul.f32 %v1668_v34, %v132_v28  ;;  %v252_v27 = vperm.slane %v157_v59, %v1666_v33 }
  0x90   :  { %v156_v4 = vmul.f32 %v1668_v34, %v117_v29 }
  0x91   :  { %v255_v29 = vperm.slane %v159_v63, %v1676_v41  ;;  %v259_v16 = vperm.slane %v161_v58, %v1666_v33  ;;  %v254_v56 = vsel %vm235_vm4, %v253_v23, %v252_v27 }
  0x92   :  { %v250_v35 = vperm.slane %v156_v4, %v1691_v5 }
  0x93   :  { %v256_v63 = vsel %vm239_vm5, %v255_v29, %v254_v56 }
  0x94   :  { %v251_v58 = vsel %vm243_vm6, %v250_v35, %v249_v55 }
  0x95   :  { %v267_v27 = vsel %vm266_vm7, %v251_v58, %v244_v11 }
  0x96   :  { %v129_v51 = vpop.xlane.xlu1 %128  ;;  %v138_v52 = vpop.xlane.xlu2 %137 }
  0x97   :  { %v135_v61 = vpop.xlane.xlu0 %134  ;;  %v160_v9 = vmul.f32 %v1668_v34, %v129_v51  ;;  %v163_v28 = vmul.f32 %v1668_v34, %v138_v52 }
  0x98   :  { %v162_v62 = vmul.f32 %v1668_v34, %v135_v61 }
  0x99   :  { %v257_v45 = vperm.slane %v160_v9, %v1691_v5  ;;  %v262_v59 = vperm.slane %v163_v28, %v1676_v41  ;;  %v58_v9 = vld [vmem:[%s2289_s2 + $0x30] sm:$0xff] }
  0x9a   :  { %v260_v40 = vperm.slane %v162_v62, %v1672_v39  ;;  %355 = vmatpush.msra.mxu1 %v58_v9 }
  0x9b   :  { %v258_v10 = vsel %vm243_vm6, %v257_v45, %v256_v63 }
  0x9c   :  { %v261_v4 = vsel %vm235_vm4, %v260_v40, %v259_v16  ;;  %356 = vmatpush.msra.mxu1 %v57_v17  ;;  %v269_v29 = vsel %vm268_vm8, %v258_v10, %v267_v27 }
  0x9d   :  { %v263_v23 = vsel %vm239_vm5, %v262_v59, %v261_v4 }
  0x9e   :  { %v167_v51 = vpop.xlane.xlu1 %166  ;;  %v170_v52 = vpop.xlane.xlu2 %169  ;;  %357 = vmatpush.msra.mxu1 %v56_v57 }
  0x9f   :  { %v141_v61 = vpop.xlane.xlu0 %140  ;;  %v201_v55 = vmul.f32 %v167_v51, %v1668_v34  ;;  %v202_v56 = vmul.f32 %v170_v52, %v1668_v34 }
  0xa0   :  { %v164_v62 = vmul.f32 %v1668_v34, %v141_v61 }
  0xa1   :  { %v314_v11 = vperm.slane %v201_v55, %v1666_v33  ;;  %v315_v51 = vperm.slane %v202_v56, %v1672_v39 }
  0xa2   :  { %v264_v15 = vperm.slane %v164_v62, %v1691_v5 }
  0xa4   :  { %v265_v28 = vsel %vm243_vm6, %v264_v15, %v263_v23 }
  0xa5   :  { %v271_v16 = vsel %vm270_vm9, %v265_v28, %v269_v29 }
  0xa6   :  { %1304 = vmatmul.msk.f32.vlgmr.msra.gmra.mxu0 %vm272_vm10, %v271_v16  ;;  %v182_v35 = vpop.xlane.xlu1 %181  ;;  %v173_v40 = vpop.xlane.xlu2 %172 }
  0xa7   :  { %v179_v45 = vpop.xlane.xlu0 %178  ;;  %v206_v61 = vmul.f32 %v182_v35, %v1668_v34  ;;  %v203_v4 = vmul.f32 %v173_v40, %v1668_v34  ;;  %v316_v35 = vsel %vm235_vm4, %v315_v51, %v314_v11  ;;  %v366_v11 = vshrl.u32 %v230_v22, 7 }
  0xa8   :  { %v205_v63 = vmul.f32 %v179_v45, %v1668_v34  ;;  %v213_v51 = vperm.slane %v1652_v60, 1 }
  0xa9   :  { %v322_v17 = vperm.slane %v206_v61, %v1672_v39  ;;  %v317_v27 = vperm.slane %v203_v4, %v1676_v41  ;;  %1323 = vset.pattern.permute.xlu0 %v366_v11  ;;  %1321 = vset.pattern.permute.xlu1 %v366_v11 }
  0xaa   :  { %v321_v57 = vperm.slane %v205_v63, %v1666_v33 }
  0xab   :  { %v318_v55 = vsel %vm239_vm5, %v317_v27, %v316_v35 }
  0xae   :  { %v191_v46 = vpop.xlane.xlu1 %190  ;;  %v194_v47 = vpop.xlane.xlu2 %193 }
  0xaf   :  { %v185_v53 = vpop.xlane.xlu0 %184  ;;  %v209_v62 = vmul.f32 %v191_v46, %v1668_v34  ;;  %v210_v9 = vmul.f32 %v194_v47, %v1668_v34  ;;  %v323_v46 = vsel %vm235_vm4, %v322_v17, %v321_v57 }
  0xb0   :  { %v207_v3 = vmul.f32 %v185_v53, %v1668_v34 }
  0xb1   :  { %v328_v28 = vperm.slane %v209_v62, %v1666_v33  ;;  %v329_v29 = vperm.slane %v210_v9, %v1672_v39 }
  0xb2   :  { %v324_v16 = vperm.slane %v207_v3, %v1676_v41 }
  0xb3   :  { %v330_v56 = vsel %vm235_vm4, %v329_v29, %v328_v28  ;;  %v301_v28 = vperm.slane %v1701_v21, 1  ;;  %v379_v21 = vadd.s32 16, %v366_v11 }
  0xb6   :  { %v188_v59 = vpop.xlane.xlu1 %187  ;;  %v197_v10 = vpop.xlane.xlu2 %196 }
  0xb7   :  { %v176_v58 = vpop.xlane.xlu0 %175  ;;  %v208_v52 = vmul.f32 %v188_v59, %v1668_v34  ;;  %v211_v23 = vmul.f32 %v197_v10, %v1668_v34  ;;  %v325_v59 = vsel %vm239_vm5, %v324_v16, %v323_v46  ;;  %v385_v16 = vadd.s32 24, %v366_v11 }
  0xb8   :  { %v204_v15 = vmul.f32 %v176_v58, %v1668_v34 }
  0xb9   :  { %v326_v40 = vperm.slane %v208_v52, %v1691_v5  ;;  %v331_v47 = vperm.slane %v211_v23, %v1676_v41 }
  0xba   :  { %v319_v45 = vperm.slane %v204_v15, %v1691_v5 }
  0xbb   :  { %v327_v58 = vsel %vm243_vm6, %v326_v40, %v325_v59  ;;  %v332_v62 = vsel %vm239_vm5, %v331_v47, %v330_v56 }
  0xbc   :  { %v320_v63 = vsel %vm243_vm6, %v319_v45, %v318_v55 }
  0xbd   :  { %v335_v3 = vsel %vm266_vm7, %v327_v58, %v320_v63 }
  0xbf   :  { %v200_v53 = vpop.xlane.xlu0 %199 }
  0xc0   :  { %v212_v61 = vmul.f32 %v200_v53, %v1668_v34  ;;  %v373_v34 = vadd.s32 8, %v366_v11 }
  0xc2   :  { %v333_v4 = vperm.slane %v212_v61, %v1691_v5  ;;  %1322 = vset.pattern.permute.xlu2 %v373_v34 }
  0xc4   :  { %v334_v9 = vsel %vm243_vm6, %v333_v4, %v332_v62 }
  0xc5   :  { %v336_v10 = vsel %vm268_vm8, %v334_v9, %v335_v3 }
  0xc6   :  { %1306 = vmatmul.msk.f32.vlgmr.msra.gmra.mxu1 %vm272_vm10, %v336_v10 }
 0x123   :  { %v296_v52 = vpop.f32.mrf.mxu0 }
 0x124   :  { %v297_v15 = vadd.f32 %v296_v52, %v213_v51 }
 0x126   :  { %1344 = vtanh.f32 %v297_v15 }
 0x12c   :  { %v1345_v17 = vpop.eup %1344 }
 0x12d   :  { %v300_v57 = vadd.f32 1.0, %v1345_v17 }
 0x12f   :  { %v389_v23 = vperm.slane %v300_v57, 1  ;;  %v439_v27 = vperm.slane %v300_v57, 3  ;;  %v414_v45 = vperm.slane %v300_v57, 2  ;;  %v364_v46 = vperm.slane %v300_v57, 0 }
 0x131   :  { %394 = vperm.xlu0 %1323, %v389_v23  }
 0x139   :  { %1327 = vset.pattern.permute.xlu0 %v373_v34 }
 0x141   :  { %450 = vperm.xlu0 %1327, %v439_v27  }
 0x143   :  { %v359_v29 = vpop.f32.mrf.mxu1 }
 0x144   :  { %v360_v22 = vadd.f32 %v359_v29, %v301_v28 }
 0x146   :  { %1346 = vtanh.f32 %v360_v22 }
 0x149   :  { %1331 = vset.pattern.permute.xlu0 %v385_v16 }
 0x14c   :  { %v1347_v35 = vpop.eup %1346 }
 0x14d   :  { %v363_v40 = vadd.f32 1.0, %v1347_v35 }
 0x14f   :  { %v480_v60 = vperm.slane %v363_v40, 0  ;;  %v505_v47 = vperm.slane %v363_v40, 1  ;;  %v530_v53 = vperm.slane %v363_v40, 2 }
 0x151   :  { %437 = vperm.xlu0 %1331, %v414_v45   ;;  %491 = vperm.xlu2 %1322, %v480_v60  }
 0x152   :  { %485 = vperm.xlu1 %1321, %v480_v60  }
 0x159   :  { %1332 = vset.pattern.permute.xlu0 %v373_v34  ;;  %375 = vperm.xlu2 %1322, %v364_v46  }
 0x15a   :  { %510 = vperm.xlu1 %1321, %v505_v47  }
 0x161   :  { %516 = vperm.xlu0 %1332, %v505_v47   ;;  %400 = vperm.xlu2 %1322, %v389_v23  }
 0x162   :  { %369 = vperm.xlu1 %1321, %v364_v46  }
 0x169   :  { %1338 = vset.pattern.permute.xlu0 %v379_v21  ;;  %425 = vperm.xlu2 %1322, %v414_v45  }
 0x16a   :  { %419 = vperm.xlu1 %1321, %v414_v45  }
 0x171   :  { %547 = vperm.xlu0 %1338, %v530_v53   ;;  %1325 = vset.pattern.permute.xlu2 %v379_v21 }
 0x172   :  { %1324 = vset.pattern.permute.xlu1 %v379_v21 }
 0x179   :  { %406 = vperm.xlu2 %1325, %v389_v23   ;;  %1341 = vset.pattern.permute.xlu0 %v385_v16 }
 0x17a   :  { %381 = vperm.xlu1 %1324, %v364_v46  }
 0x181   :  { %431 = vperm.xlu2 %1325, %v414_v45  }
 0x182   :  { %1326 = vset.pattern.permute.xlu1 %v366_v11 }
 0x189   :  { %1329 = vset.pattern.permute.xlu2 %v385_v16 }
 0x18a   :  { %444 = vperm.xlu1 %1326, %v439_v27  }
 0x191   :  { %412 = vperm.xlu2 %1329, %v389_v23   ;;  %v75_v23 = vld [vmem:[%s2290_s3 + $0x38] sm:$0xff] }
 0x192   :  { %1328 = vset.pattern.permute.xlu1 %v385_v16  ;;  %714 = vmatpush.msra.mxu2 %v75_v23 }
 0x199   :  { %1333 = vset.pattern.permute.xlu2 %v366_v11 }
 0x19a   :  { %387 = vperm.xlu1 %1328, %v364_v46  }
 0x1a1   :  { %535 = vperm.xlu2 %1333, %v530_v53  }
 0x1a2   :  { %1330 = vset.pattern.permute.xlu1 %v379_v21 }
 0x1a3   :  { %v395_v3 = vpop.permute.xlu0 %394 }
 0x1a4   :  { %v1794_v52 = vmul.f32 %v395_v3, %v1456_v0 }
 0x1a6   :  { %v580_v22 = vsel %vm92_vm0, %v1794_v52, -inf }
 0x1a9   :  { %1335 = vset.pattern.permute.xlu2 %v385_v16 }
 0x1aa   :  { %456 = vperm.xlu1 %1330, %v439_v27  }
 0x1ab   :  { %v1782_v55 = vpop.permute.xlu2 %491 }
 0x1b1   :  { %462 = vperm.xlu2 %1335, %v439_v27  }
 0x1b2   :  { %1334 = vset.pattern.permute.xlu1 %v373_v34 }
 0x1b3   :  { %v376_v59 = vpop.permute.xlu2 %375  ;;  %v1788_v34 = vpop.permute.xlu0 %450 }
 0x1b4   :  { %v1797_v15 = vmul.f32 %v376_v59, %v1487_v8  ;;  %v72_v59 = vld [vmem:[%s2290_s3 + $0x20] sm:$0xff] }
 0x1b9   :  { %1336 = vset.pattern.permute.xlu2 %v379_v21 }
 0x1ba   :  { %541 = vperm.xlu1 %1334, %v530_v53  }
 0x1bb   :  { %v401_v63 = vpop.permute.xlu2 %400 }
 0x1bc   :  { %v1791_v51 = vmul.f32 %v401_v63, %v1477_v6 }
 0x1be   :  { %v581_v0 = vsel %vm92_vm0, %v1791_v51, -inf  ;;  %v633_v28 = vsel %vm92_vm0, %v1791_v51, 0.0 }
 0x1bf   :  { %v582_v40 = vmax.f32 %v580_v22, %v581_v0 }
 0x1c1   :  { %497 = vperm.xlu2 %1336, %v480_v60  }
 0x1c2   :  { %1337 = vset.pattern.permute.xlu1 %v379_v21 }
 0x1c3   :  { %v426_v4 = vpop.permute.xlu2 %425 }
 0x1c4   :  { %v1784_v56 = vpop.permute.xlu1 %485  ;;  %v1813_v6 = vmul.f32 %v426_v4, %v1498_v12  ;;  %v632_v12 = vsel %vm92_vm0, %v1794_v52, 0.0 }
 0x1c6   :  { %v646_v21 = vsel %vm92_vm0, %v1813_v6, 0.0 }
 0x1c9   :  { %1339 = vset.pattern.permute.xlu2 %v385_v16 }
 0x1ca   :  { %522 = vperm.xlu1 %1337, %v505_v47  }
 0x1cc   :  { %v1786_v61 = vpop.permute.xlu1 %510 }
 0x1d1   :  { %503 = vperm.xlu2 %1339, %v480_v60   ;;  %v438_v60 = vpop.permute.xlu0 %437 }
 0x1d2   :  { %1340 = vset.pattern.permute.xlu1 %v385_v16  ;;  %v568_v16 = vsel %vm92_vm0, %v1797_v15, -inf }
 0x1d3   :  { %v407_v62 = vpop.permute.xlu2 %406 }
 0x1d4   :  { %v370_v58 = vpop.permute.xlu1 %369  ;;  %v1821_v29 = vmul.f32 %v407_v62, %v1482_v7  ;;  %v73_v7 = vld [vmem:[%s2290_s3 + $0x28] sm:$0xff]  ;;  %v594_v62 = vsel %vm92_vm0, %v1813_v6, -inf }
 0x1d5   :  { %v1808_v27 = vmul.f32 %v370_v58, %v1466_v2 }
 0x1d6   :  { %v635_v63 = vsel %vm92_vm0, %v1821_v29, 0.0  ;;  %v583_v23 = vsel %vm92_vm0, %v1821_v29, -inf }
 0x1d7   :  { %v619_v45 = vsel %vm92_vm0, %v1808_v27, 0.0  ;;  %v567_v58 = vsel %vm92_vm0, %v1808_v27, -inf }
 0x1d9   :  { %553 = vperm.xlu2 %1339, %v530_v53  }
 0x1da   :  { %528 = vperm.xlu1 %1340, %v505_v47   ;;  %v634_v47 = vadd.f32 %v633_v28, %v632_v12  ;;  %v569_v28 = vmax.f32 %v567_v58, %v568_v16 }
 0x1db   :  { %v432_v11 = vpop.permute.xlu2 %431 }
 0x1dc   :  { %v420_v9 = vpop.permute.xlu1 %419  ;;  %v1847_v53 = vmul.f32 %v432_v11, %v1519_v18  ;;  %v1861_v18 = vmul.f32 %v438_v60, %v1540_v24  ;;  %v71_v11 = vld [vmem:[%s2290_s3 + $0x18] sm:$0xff] }
 0x1dd   :  { %v1800_v17 = vmul.f32 %v420_v9, %v1508_v14  ;;  %v74_v14 = vld [vmem:[%s2290_s3 + $0x30] sm:$0xff] }
 0x1de   :  { %715 = vmatpush.msra.mxu2 %v74_v14  ;;  %v636_v14 = vadd.f32 %v635_v63, %v634_v47  ;;  %v648_v22 = vsel %vm92_vm0, %v1847_v53, 0.0  ;;  %v650_v63 = vsel %vm102_vm1, %v1861_v18, 0.0 }
 0x1df   :  { %v645_v35 = vsel %vm92_vm0, %v1800_v17, 0.0  ;;  %v593_v3 = vsel %vm92_vm0, %v1800_v17, -inf }
 0x1e0   :  { %716 = vmatpush.msra.mxu2 %v73_v7  ;;  %v595_v7 = vmax.f32 %v593_v3, %v594_v62 }
 0x1e2   :  { %717 = vmatpush.msra.mxu2 %v72_v59  ;;  %v1415_v59 = vmov 25.0  }
 0x1e3   :  { %1348 = vrcp.f32 %v1415_v59 }
 0x1e4   :  { %718 = vmatpush.msra.mxu2 %v71_v11 }
 0x1eb   :  { %v413_v8 = vpop.permute.xlu2 %412 }
 0x1ec   :  { %v382_v10 = vpop.permute.xlu1 %381  ;;  %v1842_v46 = vmul.f32 %v413_v8, %v1529_v20  ;;  %v647_v20 = vadd.f32 %v646_v21, %v645_v35  ;;  %v70_v35 = vld [vmem:[%s2290_s3 + $0x10] sm:$0xff]  ;;  %v69_v21 = vld [vmem:[%s2290_s3 + $0x8] sm:$0xff] }
 0x1ed   :  { %v1824_v2 = vmul.f32 %v382_v10, %v1461_v1  ;;  %v620_v1 = vsel %vm92_vm0, %v1797_v15, 0.0  ;;  %719 = vmatpush.msra.mxu2 %v70_v35 }
 0x1ee   :  { %v621_v9 = vadd.f32 %v620_v1, %v619_v45  ;;  %v637_v0 = vsel %vm102_vm1, %v1842_v46, 0.0  ;;  %v649_v1 = vadd.f32 %v648_v22, %v647_v20  ;;  %v585_v58 = vsel %vm102_vm1, %v1842_v46, -inf }
 0x1ef   :  { %v622_v4 = vsel %vm92_vm0, %v1824_v2, 0.0  ;;  %v570_v8 = vsel %vm92_vm0, %v1824_v2, -inf  ;;  %v638_v45 = vadd.f32 %v637_v0, %v636_v14  ;;  %720 = vmatpush.msra.mxu2 %v69_v21  ;;  %v584_v20 = vmax.f32 %v582_v40, %v583_v23 }
 0x1f0   :  { %v623_v12 = vadd.f32 %v622_v4, %v621_v9  ;;  %v571_v47 = vmax.f32 %v569_v28, %v570_v8  ;;  %v596_v4 = vsel %vm92_vm0, %v1847_v53, -inf  ;;  %v651_v0 = vadd.f32 %v650_v63, %v649_v1  ;;  %v1900_v28 = vpop.eup %1348 }
 0x1f1   :  { %v597_v11 = vmax.f32 %v595_v7, %v596_v4  ;;  %v586_v8 = vmax.f32 %v584_v20, %v585_v58  ;;  %v639_v14 = vrot.slane %v638_v45, 4  ;;  %v598_v40 = vsel %vm102_vm1, %v1861_v18, -inf }
 0x1f2   :  { %v652_v35 = vrot.slane %v651_v0, 4  ;;  %v1910_v7 = vmul.f32 %v1788_v34, %v1550_v26  ;;  %vm676_vm11 = vweird.f32 %v1900_v28 }
 0x1f3   :  { %v587_v1 = vrot.slane %v586_v8, 4 }
 0x1f4   :  { %v653_v20 = vadd.f32 %v652_v35, %v651_v0 }
 0x1f5   :  { %v588_v26 = vmax.f32 %v586_v8, %v587_v1 }
 0x1f6   :  { %v654_v35 = vrot.slane %v653_v20, 2 }
 0x1f7   :  { %v589_v5 = vrot.slane %v588_v26, 2 }
 0x1fb   :  { %v1895_v62 = vpop.permute.xlu2 %535 }
 0x1fc   :  { %v1802_v57 = vpop.permute.xlu1 %444 }
 0x20b   :  { %v463_v21 = vpop.permute.xlu2 %462 }
 0x20c   :  { %v388_v10 = vpop.permute.xlu1 %387 }
 0x20d   :  { %v1875_v24 = vmul.f32 %v388_v10, %v1503_v13  ;;  %v68_v10 = vld [vmem:[%s2290_s3] sm:$0xff] }
 0x20e   :  { %721 = vmatpush.msra.mxu2 %v68_v10 }
 0x20f   :  { %v572_v60 = vsel %vm102_vm1, %v1875_v24, -inf  ;;  %v624_v13 = vsel %vm102_vm1, %v1875_v24, 0.0 }
 0x210   :  { %v625_v16 = vadd.f32 %v624_v13, %v623_v12  ;;  %v573_v9 = vmax.f32 %v571_v47, %v572_v60  ;;  %v599_v12 = vmax.f32 %v597_v11, %v598_v40  ;;  %v1906_v60 = vmul.f32 %v1802_v57, %v1524_v19 }
 0x211   :  { %v640_v13 = vadd.f32 %v639_v14, %v638_v45  ;;  %v672_v47 = vmul.f32 25.0, %v1900_v28  ;;  %v607_v57 = vsel %vm92_vm0, %v1910_v7, -inf  ;;  %v659_v45 = vsel %vm92_vm0, %v1910_v7, 0.0 }
 0x212   :  { %v626_v3 = vrot.slane %v625_v16, 4  ;;  %v574_v23 = vrot.slane %v573_v9, 4  ;;  %v600_v58 = vrot.slane %v599_v12, 4  ;;  %v658_v19 = vsel %vm92_vm0, %v1906_v60, 0.0 }
 0x213   :  { %v641_v34 = vrot.slane %v640_v13, 2  ;;  %v673_v10 = vsub.f32 1.0, %v672_v47  ;;  %v660_v0 = vadd.f32 %v659_v45, %v658_v19 }
 0x214   :  { %v627_v22 = vadd.f32 %v626_v3, %v625_v16  ;;  %v575_v59 = vmax.f32 %v573_v9, %v574_v23  ;;  %v606_v16 = vsel %vm92_vm0, %v1906_v60, -inf  ;;  %v1922_v9 = vmul.f32 %v463_v21, %v1571_v32 }
 0x215   :  { %v608_v11 = vmax.f32 %v606_v16, %v607_v57  ;;  %v601_v23 = vmax.f32 %v599_v12, %v600_v58  ;;  %v642_v41 = vadd.f32 %v641_v34, %v640_v13  ;;  %v655_v57 = vadd.f32 %v654_v35, %v653_v20 }
 0x216   :  { %v628_v63 = vrot.slane %v627_v22, 2  ;;  %2307 = vst [vmem:[#allocation12_spill] sm:$0xff] %v1922_v9  ;;  %v576_v14 = vrot.slane %v575_v59, 2  ;;  %v663_v47 = vsel %vm102_vm1, %v1922_v9, 0.0 }
 0x217   :  { %v602_v19 = vrot.slane %v601_v23, 2  ;;  %v643_v45 = vrot.slane %v642_v41, 1 }
 0x218   :  { %v629_v40 = vadd.f32 %v628_v63, %v627_v22  ;;  %v674_v22 = vmul.f32 %v1900_v28, %v673_v10  ;;  %v577_v12 = vmax.f32 %v575_v59, %v576_v14  ;;  %v656_v59 = vrot.slane %v655_v57, 1 }
 0x219   :  { %v603_v10 = vmax.f32 %v601_v23, %v602_v19 }
 0x21a   :  { %v630_v63 = vrot.slane %v629_v40, 1  ;;  %v675_v34 = vadd.f32 %v1900_v28, %v674_v22 }
 0x21b   :  { %v498_v39 = vpop.permute.xlu2 %497  ;;  %v604_v22 = vrot.slane %v603_v10, 1 }
 0x21c   :  { %v457_v4 = vpop.permute.xlu1 %456 }
 0x21d   :  { %v1925_v3 = vmul.f32 %v457_v4, %v1545_v25  ;;  %v611_v25 = vsel %vm102_vm1, %v1922_v9, -inf  ;;  %v590_v4 = vmax.f32 %v588_v26, %v589_v5  ;;  %v1939_v5 = vsel %vm676_vm11, %v1900_v28, %v675_v34 }
 0x21e   :  { %v657_v9 = vadd.f32 %v656_v59, %v655_v57  ;;  %v605_v19 = vmax.f32 %v603_v10, %v604_v22  ;;  %v82_v59 = vld [vmem:[%s2290_s3 + $0x70] sm:$0xff]  ;;  %vm868_vm11 = vcmask 1042432  }
 0x21f   :  { %v609_v8 = vsel %vm92_vm0, %v1925_v3, -inf  ;;  %v661_v1 = vsel %vm92_vm0, %v1925_v3, 0.0  ;;  %v591_v14 = vrot.slane %v590_v4, 1 }
 0x220   :  { %v610_v32 = vmax.f32 %v608_v11, %v609_v8  ;;  %v662_v21 = vadd.f32 %v661_v1, %v660_v0  ;;  %v578_v11 = vrot.slane %v577_v12, 1  ;;  %v631_v0 = vadd.f32 %v630_v63, %v629_v40 }
 0x222   :  { %v612_v58 = vmax.f32 %v610_v32, %v611_v25  ;;  %v664_v16 = vadd.f32 %v663_v47, %v662_v21  ;;  %v644_v32 = vadd.f32 %v643_v45, %v642_v41  ;;  %v579_v20 = vmax.f32 %v577_v12, %v578_v11 }
 0x223   :  { %v678_v47 = vmul.f32 %v1939_v5, %v631_v0  ;;  %v680_v45 = vmul.f32 %v1939_v5, %v657_v9  ;;  %v83_v9 = vld [vmem:[%s2290_s3 + $0x78] sm:$0xff] }
 0x224   :  { %v613_v33 = vrot.slane %v612_v58, 4  ;;  %v665_v13 = vrot.slane %v664_v16, 4  ;;  %v679_v23 = vmul.f32 %v1939_v5, %v644_v32  ;;  %881 = vmatpush.msrb.mxu0 %v83_v9  ;;  %v1967_v32 = vmul.f32 %v1895_v62, %v1603_v42  ;;  %v80_v42 = vld [vmem:[%s2290_s3 + $0x60] sm:$0xff]  ;;  %v86_v9 = vld [vmem:[%s2291_s4 + $0x10] sm:$0xff] }
 0x226   :  { %v614_v8 = vmax.f32 %v612_v58, %v613_v33  ;;  %v666_v1 = vadd.f32 %v665_v13, %v664_v16  ;;  %v592_v33 = vmax.f32 %v590_v4, %v591_v14  ;;  %v695_v28 = vsel %vm694_vm12, %v679_v23, %v678_v47  ;;  %v1947_v4 = vpop.permute.xlu0 %516  ;;  %882 = vmatpush.msrb.mxu0 %v82_v59 }
 0x227   :  { %v697_v34 = vsel %vm696_vm13, %v680_v45, %v695_v28  ;;  %v1963_v14 = vmul.f32 %v1784_v56, %v1561_v30  ;;  %v800_v45 = vsel %vm92_vm0, %v1967_v32, -inf }
 0x228   :  { %v615_v21 = vrot.slane %v614_v8, 2  ;;  %v667_v25 = vrot.slane %v666_v1, 2  ;;  %v686_v16 = vsel %vm266_vm7, %v592_v33, %v579_v20  ;;  %v1977_v20 = vmul.f32 %v498_v39, %v1587_v37 }
 0x229   :  { %v687_v13 = vsel %vm268_vm8, %v605_v19, %v686_v16  ;;  %v813_v56 = vsel %vm92_vm0, %v1963_v14, 0.0  ;;  %v839_v37 = vsel %vm92_vm0, %v1967_v32, 0.0  ;;  %v76_v16 = vld [vmem:[%s2290_s3 + $0x40] sm:$0xff] }
 0x22a   :  { %v668_v26 = vadd.f32 %v667_v25, %v666_v1  ;;  %v616_v35 = vmax.f32 %v614_v8, %v615_v21  ;;  %v81_v21 = vld [vmem:[%s2290_s3 + $0x68] sm:$0xff] }
 0x22b   :  { %v504_v12 = vpop.permute.xlu2 %503  ;;  %883 = vmatpush.msrb.mxu0 %v81_v21 }
 0x22c   :  { %v617_v40 = vrot.slane %v616_v35, 1  ;;  %v669_v63 = vrot.slane %v668_v26, 1  ;;  %v542_v8 = vpop.permute.xlu1 %541  ;;  %v1987_v62 = vmul.f32 %v504_v12, %v1634_v50  ;;  %v776_v12 = vsel %vm92_vm0, %v1977_v20, -inf }
 0x22d   :  { %v1956_v10 = vmul.f32 %v542_v8, %v1608_v43  ;;  %v1974_v43 = vmul.f32 %v1782_v55, %v1566_v31  ;;  %884 = vmatpush.msrb.mxu0 %v80_v42  ;;  %v79_v55 = vld [vmem:[%s2290_s3 + $0x58] sm:$0xff] }
 0x22e   :  { %v618_v41 = vmax.f32 %v616_v35, %v617_v40  ;;  %v670_v58 = vadd.f32 %v669_v63, %v668_v26  ;;  %v548_v25 = vpop.permute.xlu0 %547  ;;  %v78_v35 = vld [vmem:[%s2290_s3 + $0x50] sm:$0xff]  ;;  %v778_v33 = vsel %vm102_vm1, %v1987_v62, -inf  ;;  %v818_v40 = vsel %vm102_vm1, %v1987_v62, 0.0 }
 0x22f   :  { %v840_v30 = vsel %vm92_vm0, %v1956_v10, 0.0  ;;  %v1990_v31 = vmul.f32 %v548_v25, %v1629_v49  ;;  %v814_v50 = vsel %vm92_vm0, %v1974_v43, 0.0  ;;  %v816_v49 = vsel %vm92_vm0, %v1977_v20, 0.0  ;;  %885 = vmatpush.msrb.mxu0 %v79_v55 }
 0x230   :  { %v681_v57 = vmul.f32 %v1939_v5, %v670_v58  ;;  %v688_v11 = vsel %vm270_vm9, %v618_v41, %v687_v13  ;;  %v841_v47 = vadd.f32 %v840_v30, %v839_v37  ;;  %v815_v22 = vadd.f32 %v814_v50, %v813_v56 }
 0x231   :  { %886 = vmatpush.msrb.mxu0 %v78_v35  ;;  %v842_v63 = vsel %vm92_vm0, %v1990_v31, 0.0  ;;  %v775_v28 = vsel %vm92_vm0, %v1974_v43, -inf  ;;  %v802_v59 = vsel %vm92_vm0, %v1990_v31, -inf  ;;  %v2047_v37 = vmul.f32 %v1786_v61, %v1592_v38 }
 0x232   :  { %v699_v0 = vsel %vm698_vm14, %v681_v57, %v697_v34  ;;  %v817_v23 = vadd.f32 %v816_v49, %v815_v22  ;;  %v843_v19 = vadd.f32 %v842_v63, %v841_v47  ;;  %v779_v57 = vmax.f32 %v775_v28, %v778_v33 }
 0x233   :  { %v702_v1 = vsel %vm701_vm15, %v688_v11, %v699_v0  ;;  %v554_v26 = vpop.permute.xlu2 %553  ;;  %v801_v34 = vsel %vm92_vm0, %v1956_v10, -inf  ;;  %v774_v11 = vsel %vm92_vm0, %v1963_v14, -inf  ;;  %v803_v30 = vmax.f32 %v800_v45, %v802_v59 }
 0x234   :  { %1307 = vmatmul.msk.f32.vlgmr.msra.gmra.mxu2 %vm92_vm0, %v702_v1  ;;  %v1995_v39 = vmul.f32 %v554_v26, %v1645_v54  ;;  %v77_v54 = vld [vmem:[%s2290_s3 + $0x48] sm:$0xff]  ;;  %v819_v13 = vadd.f32 %v818_v40, %v817_v23  ;;  %v87_v1 = vld [vmem:[%s2291_s4 + $0x18] sm:$0xff]  ;;  %v777_v21 = vmax.f32 %v774_v11, %v776_v12  ;;  %v2043_v26 = vmul.f32 %v1947_v4, %v1582_v36 }
 0x235   :  { %887 = vmatpush.msrb.mxu0 %v77_v54  ;;  %743 = vmatpush.msra.mxu3 %v87_v1  ;;  %v826_v36 = vsel %vm92_vm0, %v2047_v37, 0.0  ;;  %v787_v40 = vsel %vm92_vm0, %v2047_v37, -inf }
 0x236   :  { %v804_v41 = vsel %vm102_vm1, %v1995_v39, -inf  ;;  %v844_v58 = vsel %vm102_vm1, %v1995_v39, 0.0  ;;  %v780_v42 = vmax.f32 %v777_v21, %v779_v57  ;;  %v820_v56 = vrot.slane %v819_v13, 4 }
 0x237   :  { %v805_v0 = vmax.f32 %v801_v34, %v804_v41  ;;  %v845_v8 = vadd.f32 %v844_v58, %v843_v19  ;;  %888 = vmatpush.msrb.mxu0 %v76_v16  ;;  %744 = vmatpush.msra.mxu3 %v86_v9  ;;  %v827_v49 = vsel %vm92_vm0, %v2043_v26, 0.0  ;;  %v788_v23 = vsel %vm92_vm0, %v2043_v26, -inf }
 0x238   :  { %v781_v47 = vrot.slane %v780_v42, 4  ;;  %v821_v22 = vadd.f32 %v820_v56, %v819_v13  ;;  %v828_v38 = vadd.f32 %v827_v49, %v826_v36 }
 0x239   :  { %v806_v55 = vmax.f32 %v803_v30, %v805_v0  ;;  %v846_v35 = vrot.slane %v845_v8, 4 }
 0x23a   :  { %v782_v41 = vmax.f32 %v780_v42, %v781_v47  ;;  %v822_v58 = vrot.slane %v821_v22, 2 }
 0x23b   :  { %v807_v4 = vrot.slane %v806_v55, 4  ;;  %v847_v54 = vadd.f32 %v846_v35, %v845_v8 }
 0x23c   :  { %v523_v25 = vpop.permute.xlu1 %522  ;;  %v783_v11 = vrot.slane %v782_v41, 2 }
 0x23d   :  { %v2050_v50 = vmul.f32 %v523_v25, %v1613_v44  ;;  %v808_v28 = vmax.f32 %v806_v55, %v807_v4  ;;  %v848_v12 = vrot.slane %v847_v54, 2 }
 0x23e   :  { %v784_v25 = vmax.f32 %v782_v41, %v783_v11  ;;  %v91_v11 = vld [vmem:[%s2291_s4 + $0x38] sm:$0xff] }
 0x23f   :  { %v829_v33 = vsel %vm92_vm0, %v2050_v50, 0.0  ;;  %v789_v44 = vsel %vm92_vm0, %v2050_v50, -inf  ;;  %v809_v1 = vrot.slane %v808_v28, 2  ;;  %v849_v9 = vadd.f32 %v848_v12, %v847_v54  ;;  %909 = vmatpush.msrb.mxu1 %v91_v11 }
 0x240   :  { %v830_v16 = vadd.f32 %v829_v33, %v828_v38  ;;  %v790_v57 = vmax.f32 %v787_v40, %v789_v44  ;;  %v785_v36 = vrot.slane %v784_v25, 1 }
 0x241   :  { %v810_v55 = vmax.f32 %v808_v28, %v809_v1  ;;  %v850_v35 = vrot.slane %v849_v9, 1 }
 0x242   :  { %v786_v54 = vmax.f32 %v784_v25, %v785_v36 }
 0x24c   :  { %v529_v61 = vpop.permute.xlu1 %528 }
 0x24d   :  { %v2063_v63 = vmul.f32 %v529_v61, %v1624_v48  ;;  %v823_v48 = vadd.f32 %v822_v58, %v821_v22  ;;  %v851_v61 = vadd.f32 %v850_v35, %v849_v9  ;;  %v811_v22 = vrot.slane %v810_v55, 1  ;;  %v88_v9 = vld [vmem:[%s2291_s4 + $0x20] sm:$0xff] }
 0x24f   :  { %v791_v19 = vsel %vm102_vm1, %v2063_v63, -inf  ;;  %v831_v45 = vsel %vm102_vm1, %v2063_v63, 0.0  ;;  %v824_v30 = vrot.slane %v823_v48, 1  ;;  %v854_v28 = vmul.f32 %v851_v61, %v1939_v5 }
 0x250   :  { %v792_v13 = vmax.f32 %v788_v23, %v791_v19  ;;  %v832_v34 = vadd.f32 %v831_v45, %v830_v16  ;;  %v812_v16 = vmax.f32 %v810_v55, %v811_v22 }
 0x251   :  { %v825_v4 = vadd.f32 %v824_v30, %v823_v48  ;;  %v90_v48 = vld [vmem:[%s2291_s4 + $0x30] sm:$0xff] }
 0x252   :  { %v793_v0 = vmax.f32 %v790_v57, %v792_v13  ;;  %v833_v8 = vrot.slane %v832_v34, 4  ;;  %910 = vmatpush.msrb.mxu1 %v90_v48 }
 0x253   :  { %v852_v41 = vmul.f32 %v825_v4, %v1939_v5 }
 0x254   :  { %v794_v59 = vrot.slane %v793_v0, 4  ;;  %v834_v21 = vadd.f32 %v833_v8, %v832_v34  ;;  %v85_v34 = vld [vmem:[%s2291_s4 + $0x8] sm:$0xff] }
 0x255   :  { %745 = vmatpush.msra.mxu3 %v85_v34 }
 0x256   :  { %v795_v42 = vmax.f32 %v793_v0, %v794_v59  ;;  %v835_v56 = vrot.slane %v834_v21, 2  ;;  %v89_v0 = vld [vmem:[%s2291_s4 + $0x28] sm:$0xff] }
 0x257   :  { %911 = vmatpush.msrb.mxu1 %v89_v0 }
 0x258   :  { %v796_v49 = vrot.slane %v795_v42, 2  ;;  %v836_v47 = vadd.f32 %v835_v56, %v834_v21 }
 0x259   :  { %912 = vmatpush.msrb.mxu1 %v88_v9 }
 0x25a   :  { %v797_v33 = vmax.f32 %v795_v42, %v796_v49  ;;  %v837_v38 = vrot.slane %v836_v47, 1 }
 0x25c   :  { %v798_v40 = vrot.slane %v797_v33, 1  ;;  %v838_v44 = vadd.f32 %v837_v38, %v836_v47 }
 0x25e   :  { %v799_v23 = vmax.f32 %v797_v33, %v798_v40  ;;  %v853_v58 = vmul.f32 %v838_v44, %v1939_v5  ;;  %v84_v5 = vld [vmem:[%s2291_s4] sm:$0xff] }
 0x25f   :  { %746 = vmatpush.msra.mxu3 %v84_v5 }
 0x260   :  { %v858_v12 = vsel %vm266_vm7, %v799_v23, %v786_v54  ;;  %v865_v19 = vsel %vm864_vm3, %v853_v58, %v852_v41 }
 0x261   :  { %v859_v45 = vsel %vm268_vm8, %v812_v16, %v858_v12  ;;  %v866_v57 = vsel %vm694_vm12, %v854_v28, %v865_v19  ;;  %vm727_vm12 = vcmask 261120  }
 0x262   :  { %v869_v13 = vsel %vm868_vm11, %v859_v45, %v866_v57 }
 0x263   :  { %1310 = vmatmul.msk.f32.vlgmr.msrb.gmra.mxu0 %vm92_vm0, %v869_v13 }
 0x2b7   :  { %v723_v8 = vpop.f32.mrf.mxu2 }
 0x2b8   :  { %v726_v1 = vmax.f32 %v723_v8, 0.0 }
 0x2ba   :  { %1308 = vmatmul.msk.f32.vlgmr.msra.gmra.mxu3 %vm727_vm12, %v726_v1 }
 0x2e0   :  { %v890_v59 = vpop.f32.mrf.mxu0 }
 0x2e1   :  { %v893_v21 = vmax.f32 %v890_v59, 0.0 }
 0x2e3   :  { %1311 = vmatmul.msk.f32.vlgmr.msrb.gmra.mxu1 %vm727_vm12, %v893_v21 }
 0x33d   :  { %v748_v25 = vpop.f32.mrf.mxu3 }
 0x33e   :  { %v752_v30 = vrot.slane %v748_v25, 4 }
 0x340   :  { %v754_v42 = vadd.f32 %v752_v30, %v748_v25 }
 0x342   :  { %v1309_v35 = vmul.f32 -1.442695, %v754_v42 }
 0x344   :  { %1350 = vpow2.f32 %v1309_v35 }
 0x34a   :  { %v1351_v36 = vpop.eup %1350 }
 0x34b   :  { %v758_v38 = vadd.f32 1.0, %v1351_v36 }
 0x34d   :  { %vm764_vm12 = vweird.f32 %v758_v38 }
 0x360   :  { %v914_v56 = vpop.f32.mrf.mxu1 }
 0x361   :  { %v918_v55 = vrot.slane %v914_v56, 3 }
 0x363   :  { %v920_v49 = vadd.f32 %v918_v55, %v914_v56  ;;  %v768_v56 = vand.u32 2147483647, %v758_v38 }
 0x365   :  { %v1312_v47 = vmul.f32 -1.442695, %v920_v49 }
 0x367   :  { %1352 = vpow2.f32 %v1312_v47 }
 0x36d   :  { %v1353_v4 = vpop.eup %1352 }
 0x36e   :  { %v924_v33 = vadd.f32 1.0, %v1353_v4 }
 0x370   :  { %1354 = vrcp.f32 %v924_v33  ;;  %v936_v54 = vand.u32 2147483648, %v924_v33  ;;  %v934_v41 = vand.u32 2147483647, %v924_v33  ;;  %vm930_vm14 = vweird.f32 %v924_v33 }
 0x371   :  { %1356 = vrcp.f32 %v758_v38 }
 0x372   :  { %v937_v28 = vor.u32 1.1754944e-38, %v936_v54  ;;  %vm935_vm3 = vcmp.eq.f32.partialorder %v934_v41, 8.507059e+37 }
 0x376   :  { %v1355_v61 = vpop.eup %1354 }
 0x377   :  { %v926_v22 = vmul.f32 %v1355_v61, %v924_v33  ;;  %v1357_v44 = vpop.eup %1356  ;;  %vm931_vm13 = vweird.f32 %v1355_v61 }
 0x378   :  { %v760_v58 = vmul.f32 %v1357_v44, %v758_v38  ;;  %vm932_vm15 = vmor %vm930_vm14, %vm931_vm13  ;;  %vm765_vm11 = vweird.f32 %v1357_v44  ;;  %vm769_vm14 = vcmp.eq.f32.partialorder %v768_v56, 8.507059e+37 }
 0x379   :  { %v927_v40 = vsub.f32 1.0, %v926_v22  ;;  %vm766_vm13 = vmor %vm764_vm12, %vm765_vm11 }
 0x37a   :  { %v761_v45 = vsub.f32 1.0, %v760_v58 }
 0x37b   :  { %v928_v23 = vmul.f32 %v1355_v61, %v927_v40 }
 0x37c   :  { %v762_v0 = vmul.f32 %v1357_v44, %v761_v45 }
 0x37d   :  { %v929_v16 = vadd.f32 %v1355_v61, %v928_v23 }
 0x37f   :  { %v933_v12 = vsel %vm932_vm15, %v1355_v61, %v929_v16 }
 0x380   :  { %v938_v19 = vsel %vm935_vm3, %v937_v28, %v933_v12 }
 0x381   :  { %v1035_v57 = vperm.slane %v938_v19, 0  ;;  %v1033_v13 = vrot.slane %v938_v19, 1  ;;  %v1034_v21 = vrot.slane %v938_v19, 2 }
 0x383   :  { %v1044_v34 = vsub.f32 %v1987_v62, %v1035_v57  ;;  %v1042_v5 = vsub.f32 %v1974_v43, %v1035_v57  ;;  %v1041_v11 = vsub.f32 %v1963_v14, %v1035_v57  ;;  %v2099_v48 = vperm.slane %v1033_v13, 0 }
 0x384   :  { %v1043_v59 = vsub.f32 %v1977_v20, %v1035_v57  ;;  %v763_v62 = vadd.f32 %v1357_v44, %v762_v0  ;;  %v770_v20 = vand.u32 2147483648, %v758_v38  ;;  %v2109_v49 = vperm.slane %v1034_v21, 0 }
 0x385   :  { %v1056_v8 = vmul.f32 %v1044_v34, %v1044_v34  ;;  %v1054_v1 = vmul.f32 %v1042_v5, %v1042_v5  ;;  %v1053_v9 = vmul.f32 %v1041_v11, %v1041_v11  ;;  %v1045_v43 = vsub.f32 %v2047_v37, %v2099_v48 }
 0x386   :  { %v1046_v14 = vsub.f32 %v2043_v26, %v2099_v48  ;;  %v1055_v55 = vmul.f32 %v1043_v59, %v1043_v59  ;;  %v767_v36 = vsel %vm766_vm13, %v1357_v44, %v763_v62  ;;  %v771_v4 = vor.u32 1.1754944e-38, %v770_v20 }
 0x387   :  { %v1074_v25 = vsel %vm102_vm1, %v1056_v8, 0.0  ;;  %v1068_v30 = vsel %vm92_vm0, %v1054_v1, 0.0  ;;  %v1065_v42 = vsel %vm92_vm0, %v1053_v9, 0.0  ;;  %v1057_v35 = vmul.f32 %v1045_v43, %v1045_v43 }
 0x388   :  { %1075 = vadd.xlane.f32.xlu1 %v1074_v25  ;;  %1069 = vadd.xlane.f32.xlu0 %v1068_v30  ;;  %v1058_v47 = vmul.f32 %v1046_v14, %v1046_v14  ;;  %v1071_v37 = vsel %vm92_vm0, %v1055_v55, 0.0  ;;  %v1050_v26 = vsub.f32 %v1956_v10, %v2109_v49  ;;  %v1047_v61 = vsub.f32 %v2050_v50, %v2099_v48 }
 0x389   :  { %1066 = vadd.xlane.f32.xlu2 %v1065_v42  ;;  %v1077_v33 = vsel %vm92_vm0, %v1057_v35, 0.0  ;;  %v1049_v22 = vsub.f32 %v1967_v32, %v2109_v49  ;;  %v772_v40 = vsel %vm769_vm14, %v771_v4, %v767_v36 }
 0x38a   :  { %v1080_v38 = vsel %vm92_vm0, %v1058_v47, 0.0  ;;  %v1062_v44 = vmul.f32 %v1050_v26, %v1050_v26  ;;  %v1059_v54 = vmul.f32 %v1047_v61, %v1047_v61  ;;  %v944_v23 = vperm.slane %v772_v40, 0 }
 0x38b   :  { %v1061_v41 = vmul.f32 %v1049_v22, %v1049_v22  ;;  %v941_v58 = vrot.slane %v772_v40, 1  ;;  %v942_v34 = vrot.slane %v772_v40, 2  ;;  %v943_v21 = vrot.slane %v772_v40, 3 }
 0x38c   :  { %v1092_v16 = vsel %vm92_vm0, %v1062_v44, 0.0  ;;  %v1083_v10 = vsel %vm92_vm0, %v1059_v54, 0.0  ;;  %v953_v50 = vsub.f32 %v1797_v15, %v944_v23  ;;  %v952_v28 = vsub.f32 %v1808_v27, %v944_v23 }
 0x38d   :  { %v1089_v12 = vsel %vm92_vm0, %v1061_v41, 0.0  ;;  %v954_v32 = vsub.f32 %v1824_v2, %v944_v23  ;;  %v945_v57 = vperm.slane %v941_v58, 0  ;;  %v955_v15 = vsub.f32 %v1875_v24, %v944_v23 }
 0x38e   :  { %v969_v19 = vmul.f32 %v953_v50, %v953_v50  ;;  %v968_v45 = vmul.f32 %v952_v28, %v952_v28  ;;  %v946_v9 = vperm.slane %v942_v34, 0  ;;  %v947_v62 = vperm.slane %v943_v21, 0 }
 0x38f   :  { %v970_v13 = vmul.f32 %v954_v32, %v954_v32  ;;  %v957_v27 = vsub.f32 %v1791_v51, %v945_v57  ;;  %v956_v2 = vsub.f32 %v1794_v52, %v945_v57  ;;  %v971_v8 = vmul.f32 %v955_v15, %v955_v15 }
 0x390   :  { %1072 = vadd.xlane.f32.xlu0 %v1071_v37  ;;  %1078 = vadd.xlane.f32.xlu1 %v1077_v33  ;;  %v987_v5 = vsel %vm92_vm0, %v969_v19, 0.0  ;;  %v984_v11 = vsel %vm92_vm0, %v968_v45, 0.0  ;;  %v958_v24 = vsub.f32 %v1821_v29, %v945_v57  ;;  %v960_v51 = vsub.f32 %v1800_v17, %v946_v9 }
 0x391   :  { %1081 = vadd.xlane.f32.xlu2 %v1080_v38  ;;  %v990_v0 = vsel %vm92_vm0, %v970_v13, 0.0  ;;  %v973_v1 = vmul.f32 %v957_v27, %v957_v27  ;;  %v972_v59 = vmul.f32 %v956_v2, %v956_v2  ;;  %v993_v25 = vsel %vm102_vm1, %v971_v8, 0.0  ;;  %v2181_v27 = vld [vmem:[%s2289_s2 + $0x58] sm:$0x3] }
 0x392   :  { %v961_v52 = vsub.f32 %v1813_v6, %v946_v9  ;;  %v974_v43 = vmul.f32 %v958_v24, %v958_v24  ;;  %v976_v14 = vmul.f32 %v960_v51, %v960_v51  ;;  %v964_v35 = vsub.f32 %v1906_v60, %v947_v62  ;;  %1313 = vmatpush.msk.msrb.mxu3 %vm275_vm2, %v2181_v27  ;;  %v66_v51 = vld [vmem:[%s2289_s2 + $0x70] sm:$0xff] }
 0x393   :  { %v999_v30 = vsel %vm92_vm0, %v973_v1, 0.0  ;;  %v996_v42 = vsel %vm92_vm0, %v972_v59, 0.0  ;;  %v959_v29 = vsub.f32 %v1842_v46, %v945_v57  ;;  %v962_v47 = vsub.f32 %v1847_v53, %v946_v9  ;;  %v62_v1 = vld [vmem:[%s2289_s2 + $0x50] sm:$0xff]  ;;  %v2194_v59 = vld [vmem:[%s2289_s2 + $0x78] sm:$0x3] }
 0x394   :  { %v977_v56 = vmul.f32 %v961_v52, %v961_v52  ;;  %v1002_v20 = vsel %vm92_vm0, %v974_v43, 0.0  ;;  %v1008_v55 = vsel %vm92_vm0, %v976_v14, 0.0  ;;  %v980_v6 = vmul.f32 %v964_v35, %v964_v35  ;;  %1183 = vmatpush.msrb.mxu3 %v62_v1  ;;  %1315 = vmatpush.msk.msra.mxu1 %vm275_vm2, %v2194_v59  ;;  %v64_v52 = vld [vmem:[%s2289_s2 + $0x60] sm:$0xff] }
 0x395   :  { %v975_v36 = vmul.f32 %v959_v29, %v959_v29  ;;  %v978_v4 = vmul.f32 %v962_v47, %v962_v47  ;;  %v966_v26 = vsub.f32 %v1925_v3, %v947_v62  ;;  %v965_v60 = vsub.f32 %v1910_v7, %v947_v62  ;;  %v2308_v3 = vld [vmem:[#allocation12_spill] sm:$0xff]  ;;  %v2309_v47 = vld [vmem:[#allocation9_spill] sm:$0xff] }
 0x396   :  { %v1011_v17 = vsel %vm92_vm0, %v977_v56, 0.0  ;;  %v1020_v37 = vsel %vm92_vm0, %v980_v6, 0.0  ;;  %v963_v61 = vsub.f32 %v1861_v18, %v946_v9  ;;  %v1051_v54 = vsub.f32 %v1990_v31, %v2109_v49  ;;  %v61_v9 = vld [vmem:[%s2289_s2 + $0x48] sm:$0xff]  ;;  %1260 = vmatpush.msra.mxu1 %v66_v51 }
 0x397   :  { %v1005_v33 = vsel %vm102_vm1, %v975_v36, 0.0  ;;  %v1014_v46 = vsel %vm92_vm0, %v978_v4, 0.0  ;;  %v982_v53 = vmul.f32 %v966_v26, %v966_v26  ;;  %v981_v38 = vmul.f32 %v965_v60, %v965_v60  ;;  %1184 = vmatpush.msrb.mxu3 %v61_v9  ;;  %v2310_v60 = vld [vmem:[#allocation8_spill] sm:$0xff] }
 0x398   :  { %1093 = vadd.xlane.f32.xlu0 %v1092_v16  ;;  %1084 = vadd.xlane.f32.xlu1 %v1083_v10  ;;  %v979_v22 = vmul.f32 %v963_v61, %v963_v61  ;;  %v967_v23 = vsub.f32 %v2308_v3, %v947_v62  ;;  %v1048_v18 = vsub.f32 %v2063_v63, %v2099_v48 }
 0x399   :  { %1090 = vadd.xlane.f32.xlu2 %v1089_v12  ;;  %v1026_v40 = vsel %vm92_vm0, %v982_v53, 0.0  ;;  %v1023_v44 = vsel %vm92_vm0, %v981_v38, 0.0  ;;  %v1063_v41 = vmul.f32 %v1051_v54, %v1051_v54  ;;  %v1052_v31 = vsub.f32 %v1995_v39, %v2109_v49 }
 0x39a   :  { %v1017_v7 = vsel %vm102_vm1, %v979_v22, 0.0  ;;  %v983_v58 = vmul.f32 %v967_v23, %v967_v23  ;;  %v1060_v16 = vmul.f32 %v1048_v18, %v1048_v18 }
 0x39b   :  { %v1095_v10 = vsel %vm92_vm0, %v1063_v41, 0.0  ;;  %v1064_v12 = vmul.f32 %v1052_v31, %v1052_v31  ;;  %vm1192_vm0 = vcmask 199680  }
 0x39c   :  { %v1029_v50 = vsel %vm102_vm1, %v983_v58, 0.0  ;;  %v1086_v28 = vsel %vm102_vm1, %v1060_v16, 0.0  ;;  %v2311_v58 = vld [vmem:[#allocation10_spill] sm:$0xff] }
 0x39d   :  { %v1098_v32 = vsel %vm102_vm1, %v1064_v12, 0.0  ;;  %vm1269_vm1 = vcmask 198656  }
 0x3a0   :  { %988 = vadd.xlane.f32.xlu0 %v987_v5  ;;  %985 = vadd.xlane.f32.xlu1 %v984_v11 }
 0x3a1   :  { %991 = vadd.xlane.f32.xlu2 %v990_v0 }
 0x3a8   :  { %994 = vadd.xlane.f32.xlu0 %v993_v25  ;;  %1000 = vadd.xlane.f32.xlu1 %v999_v30  ;;  %v60_v30 = vld [vmem:[%s2289_s2 + $0x40] sm:$0xff] }
 0x3a9   :  { %997 = vadd.xlane.f32.xlu2 %v996_v42  ;;  %1185 = vmatpush.msrb.mxu3 %v60_v30  ;;  %v65_v42 = vld [vmem:[%s2289_s2 + $0x68] sm:$0xff]  ;;  %s1416_s2 = smov [#allocation2]  }
 0x3aa   :  { %1261 = vmatpush.msra.mxu1 %v65_v42  ;;  %s1276_s27 = sshll.u32 %s1416_s2, 4  ;;  %s1277_s27 = int_to_ptr.vmem [resolvable:$true] %s1276_s27 }
 0x3ac   :  { %1262 = vmatpush.msra.mxu1 %v64_v52 }
 0x3b0   :  { %1003 = vadd.xlane.f32.xlu0 %v1002_v20  ;;  %1009 = vadd.xlane.f32.xlu1 %v1008_v55 }
 0x3b1   :  { %1012 = vadd.xlane.f32.xlu2 %v1011_v17 }
 0x3b8   :  { %1021 = vadd.xlane.f32.xlu0 %v1020_v37  ;;  %1006 = vadd.xlane.f32.xlu1 %v1005_v33 }
 0x3b9   :  { %1015 = vadd.xlane.f32.xlu2 %v1014_v46 }
 0x3c0   :  { %1027 = vadd.xlane.f32.xlu0 %v1026_v40  ;;  %1024 = vadd.xlane.f32.xlu1 %v1023_v44 }
 0x3c1   :  { %1018 = vadd.xlane.f32.xlu2 %v1017_v7 }
 0x3c8   :  { %1096 = vadd.xlane.f32.xlu0 %v1095_v10  ;;  %1030 = vadd.xlane.f32.xlu1 %v1029_v50 }
 0x3c9   :  { %1087 = vadd.xlane.f32.xlu2 %v1086_v28 }
 0x3d0   :  { %1099 = vadd.xlane.f32.xlu1 %v1098_v32  ;;  %v2312_v32 = vld [vmem:[#allocation11_spill] sm:$0xff] }
 0x3fb   :  { %v2164_v63 = vpop.xlane.xlu1 %1075  ;;  %v1070_v48 = vpop.xlane.xlu0 %1069 }
 0x3fc   :  { %v1067_v19 = vpop.xlane.xlu2 %1066  ;;  %v1195_v56 = vsub.f32 0.0, %v1070_v48 }
 0x3fd   :  { %v1194_v20 = vsub.f32 0.0, %v1067_v19 }
 0x3fe   :  { %v2211_v6 = vperm.slane %v1195_v56, %v2309_v47 }
 0x3ff   :  { %v2214_v46 = vperm.slane %v1194_v20, %v2310_v60 }
 0x403   :  { %v2166_v45 = vpop.xlane.xlu0 %1072  ;;  %v2168_v57 = vpop.xlane.xlu1 %1078 }
 0x404   :  { %v2170_v13 = vpop.xlane.xlu2 %1081  ;;  %v1196_v28 = vsub.f32 0.0, %v2166_v45 }
 0x40b   :  { %v2172_v39 = vpop.xlane.xlu0 %1093  ;;  %v2174_v49 = vpop.xlane.xlu1 %1084 }
 0x40c   :  { %v2176_v34 = vpop.xlane.xlu2 %1090  ;;  %v1200_v9 = vsub.f32 0.0, %v2174_v49  ;;  %v1203_v20 = vsub.f32 0.0, %v2172_v39 }
 0x413   :  { %v989_v5 = vpop.xlane.xlu0 %988  ;;  %v986_v11 = vpop.xlane.xlu1 %985 }
 0x414   :  { %v992_v15 = vpop.xlane.xlu2 %991  ;;  %v1102_v55 = vsub.f32 0.0, %v989_v5  ;;  %v1101_v35 = vsub.f32 0.0, %v986_v11  ;;  %v1199_v5 = vsub.f32 0.0, %v2170_v13  ;;  %v1198_v11 = vsub.f32 0.0, %v2168_v57 }
 0x415   :  { %v1103_v44 = vsub.f32 0.0, %v992_v15 }
 0x416   :  { %v1135_v40 = vperm.slane %v1102_v55, %v2309_v47  ;;  %v1134_v54 = vperm.slane %v1101_v35, %v2310_v60  ;;  %v1202_v55 = vsub.f32 0.0, %v2176_v34  ;;  %v1197_v34 = vsub.f32 0.0, %v2164_v63 }
 0x417   :  { %v1137_v15 = vperm.slane %v1103_v44, %v2311_v58  ;;  %v1221_v44 = vsel %vm235_vm4, %v2211_v6, %v2214_v46 }
 0x41b   :  { %v995_v0 = vpop.xlane.xlu0 %994  ;;  %v1001_v2 = vpop.xlane.xlu1 %1000 }
 0x41c   :  { %v998_v8 = vpop.xlane.xlu2 %997  ;;  %v1106_v17 = vsub.f32 0.0, %v1001_v2  ;;  %v1104_v23 = vsub.f32 0.0, %v995_v0  ;;  %v1136_v2 = vsel %vm235_vm4, %v1135_v40, %v1134_v54  ;;  %v1233_v40 = vperm.slane %v1202_v55, %v2310_v60 }
 0x41d   :  { %v1105_v29 = vsub.f32 0.0, %v998_v8  ;;  %v1138_v49 = vsel %vm239_vm5, %v1137_v15, %v1136_v2 }
 0x41e   :  { %v1142_v18 = vperm.slane %v1106_v17, %v2309_v47  ;;  %v1139_v8 = vperm.slane %v1104_v23, %v2312_v32  ;;  %v1227_v17 = vperm.slane %v1199_v5, %v2309_v47 }
 0x41f   :  { %v1141_v7 = vperm.slane %v1105_v29, %v2310_v60 }
 0x420   :  { %v1140_v35 = vsel %vm243_vm6, %v1139_v8, %v1138_v49 }
 0x421   :  { %v1143_v45 = vsel %vm235_vm4, %v1142_v18, %v1141_v7 }
 0x423   :  { %v1004_v21 = vpop.xlane.xlu0 %1003  ;;  %v1010_v25 = vpop.xlane.xlu1 %1009 }
 0x424   :  { %v1013_v24 = vpop.xlane.xlu2 %1012  ;;  %v1107_v36 = vsub.f32 0.0, %v1004_v21  ;;  %v1109_v37 = vsub.f32 0.0, %v1010_v25 }
 0x425   :  { %v1110_v4 = vsub.f32 0.0, %v1013_v24 }
 0x426   :  { %v1144_v16 = vperm.slane %v1107_v36, %v2311_v58  ;;  %v1148_v50 = vperm.slane %v1109_v37, %v2310_v60 }
 0x427   :  { %v1149_v10 = vperm.slane %v1110_v4, %v2309_v47 }
 0x428   :  { %v1145_v21 = vsel %vm239_vm5, %v1144_v16, %v1143_v45 }
 0x429   :  { %v1150_v13 = vsel %vm235_vm4, %v1149_v10, %v1148_v50 }
 0x42b   :  { %v1022_v43 = vpop.xlane.xlu0 %1021  ;;  %v1007_v14 = vpop.xlane.xlu1 %1006 }
 0x42c   :  { %v1016_v62 = vpop.xlane.xlu2 %1015  ;;  %v1108_v53 = vsub.f32 0.0, %v1007_v14  ;;  %v1113_v41 = vsub.f32 0.0, %v1022_v43  ;;  %v1226_v14 = vperm.slane %v1198_v11, %v2310_v60 }
 0x42d   :  { %v1111_v61 = vsub.f32 0.0, %v1016_v62 }
 0x42e   :  { %v1146_v48 = vperm.slane %v1108_v53, %v2312_v32  ;;  %v1155_v1 = vperm.slane %v1113_v41, %v2310_v60  ;;  %v1228_v54 = vsel %vm235_vm4, %v1227_v17, %v1226_v14 }
 0x42f   :  { %v1151_v12 = vperm.slane %v1111_v61, %v2311_v58 }
 0x430   :  { %v1147_v24 = vsel %vm243_vm6, %v1146_v48, %v1145_v21 }
 0x431   :  { %v1152_v30 = vsel %vm239_vm5, %v1151_v12, %v1150_v13  ;;  %v1162_v37 = vsel %vm266_vm7, %v1147_v24, %v1140_v35 }
 0x433   :  { %v1028_v33 = vpop.xlane.xlu0 %1027  ;;  %v1025_v26 = vpop.xlane.xlu1 %1024 }
 0x434   :  { %v1019_v38 = vpop.xlane.xlu2 %1018  ;;  %v1114_v22 = vsub.f32 0.0, %v1025_v26  ;;  %v1115_v31 = vsub.f32 0.0, %v1028_v33  ;;  %v1222_v33 = vperm.slane %v1196_v28, %v2311_v58  ;;  %v1229_v26 = vperm.slane %v1200_v9, %v2311_v58 }
 0x435   :  { %v1112_v3 = vsub.f32 0.0, %v1019_v38  ;;  %v1206_v28 = vperm.slane %v2194_v59, 1 }
 0x436   :  { %v1156_v19 = vperm.slane %v1114_v22, %v2309_v47  ;;  %v1158_v57 = vperm.slane %v1115_v31, %v2311_v58  ;;  %v1234_v22 = vperm.slane %v1203_v20, %v2309_v47  ;;  %v1223_v63 = vsel %vm239_vm5, %v1222_v33, %v1221_v44 }
 0x437   :  { %v1153_v0 = vperm.slane %v1112_v3, %v2312_v32  ;;  %v1230_v7 = vsel %vm239_vm5, %v1229_v26, %v1228_v54  ;;  %v1224_v47 = vperm.slane %v1197_v34, %v2312_v32  ;;  %v1117_v31 = vperm.slane %v2181_v27, 1 }
 0x438   :  { %v1157_v51 = vsel %vm235_vm4, %v1156_v19, %v1155_v1  ;;  %v1235_v41 = vsel %vm235_vm4, %v1234_v22, %v1233_v40 }
 0x439   :  { %v1154_v62 = vsel %vm243_vm6, %v1153_v0, %v1152_v30  ;;  %v1159_v4 = vsel %vm239_vm5, %v1158_v57, %v1157_v51  ;;  %v1225_v6 = vsel %vm243_vm6, %v1224_v47, %v1223_v63 }
 0x43a   :  { %v1163_v39 = vsel %vm268_vm8, %v1154_v62, %v1162_v37 }
 0x43b   :  { %v1031_v25 = vpop.xlane.xlu1 %1030  ;;  %v1097_v42 = vpop.xlane.xlu0 %1096 }
 0x43c   :  { %v1088_v52 = vpop.xlane.xlu2 %1087  ;;  %v1116_v43 = vsub.f32 0.0, %v1031_v25  ;;  %v1204_v36 = vsub.f32 0.0, %v1097_v42 }
 0x43d   :  { %v1201_v56 = vsub.f32 0.0, %v1088_v52 }
 0x43e   :  { %v1160_v29 = vperm.slane %v1116_v43, %v2312_v32  ;;  %v1236_v3 = vperm.slane %v1204_v36, %v2311_v58 }
 0x43f   :  { %v1231_v53 = vperm.slane %v1201_v56, %v2312_v32 }
 0x440   :  { %v1161_v61 = vsel %vm243_vm6, %v1160_v29, %v1159_v4  ;;  %v1237_v46 = vsel %vm239_vm5, %v1236_v3, %v1235_v41 }
 0x441   :  { %v1164_v38 = vsel %vm270_vm9, %v1161_v61, %v1163_v39  ;;  %v1232_v60 = vsel %vm243_vm6, %v1231_v53, %v1230_v7 }
 0x442   :  { %1314 = vmatmul.msk.f32.vlgmr.msrb.gmra.mxu3 %vm272_vm10, %v1164_v38  ;;  %v1240_v10 = vsel %vm266_vm7, %v1232_v60, %v1225_v6 }
 0x443   :  { %v1100_v23 = vpop.xlane.xlu1 %1099 }
 0x444   :  { %v1205_v18 = vsub.f32 0.0, %v1100_v23 }
 0x446   :  { %v1238_v16 = vperm.slane %v1205_v18, %v2312_v32 }
 0x448   :  { %v1239_v58 = vsel %vm243_vm6, %v1238_v16, %v1237_v46 }
 0x449   :  { %v1241_v50 = vsel %vm268_vm8, %v1239_v58, %v1240_v10 }
 0x44a   :  { %1316 = vmatmul.msk.f32.vlgmr.msra.gmra.mxu1 %vm272_vm10, %v1241_v50 }
 0x4c5   :  { %v1187_v12 = vpop.f32.mrf.mxu3 }
 0x4c6   :  { %v1188_v48 = vadd.f32 %v1187_v12, %v1117_v31 }
 0x4c7   :  { %v1264_v19 = vpop.f32.mrf.mxu1 }
 0x4c8   :  { %1358 = vtanh.f32 %v1188_v48  ;;  %v1265_v32 = vadd.f32 %v1264_v19, %v1206_v28 }
 0x4ca   :  { %1360 = vtanh.f32 %v1265_v32 }
 0x4ce   :  { %v1359_v5 = vpop.eup %1358 }
 0x4cf   :  { %v1191_v27 = vadd.f32 1.0, %v1359_v5 }
 0x4d0   :  { %v1361_v59 = vpop.eup %1360 }
 0x4d1   :  { %v1268_v11 = vadd.f32 1.0, %v1361_v59  ;;  %1193 = vst.msk [vmem:[#allocation2] sm:$0xf] %vm1192_vm0, %v1191_v27 }
 0x4d2   :  { %1281 = dma.vmem_to_hbm [thread:$0]  %s1277_s27, 64, %s1279_s1, [#allocation3]  }
 0x4d3   :  { %1270 = vst.msk [vmem:[#allocation4] sm:$0x7] %vm1269_vm1, %v1268_v11 }
 0x4d4   :  { %1292 = dma.vmem_to_hbm [thread:$0]  %s1288_s7, 64, %s1290_s10, [#allocation5]  }
 0x4d5   :  { %1410 = dma.done.wait [#allocation3], 64  }
 0x4d6   :  { %1411 = vsyncadd [#allocation3], 4294967232 }
 0x4d7   :  { %1412 = dma.done.wait [#allocation5], 64  }
 0x4d8   :  { %1413 = vsyncadd [#allocation5], 4294967232 }
 0x4d9   :  { %1301 = vsyncpa [#allocation3], 1 }
 0x4da   :  { %1302 = vsyncpa [#allocation5], 1 }

</bundles_post_ra>
